<compile_context>
chip_gen: v7x
topology: tpu7x:2x2x1
jax: 0.10.0
libtpu: 0.0.40
codegen_flags: <defaults>
</compile_context>

<pallas_src>
import functools

import numpy as np
import jax
import jax.numpy as jnp
from jax import lax
from jax.experimental import pallas as pl
from jax.experimental.pallas import tpu as pltpu

EPS = 1e-6


def _round_up(n, m):
    return ((n + m - 1) // m) * m


def _tap_masks(H, W, K):
    """(K*K, H*W) f32 border-validity masks, one row per conv tap (kh, kw)."""
    pad = (K - 1) // 2
    HW = H * W
    hh, ww = np.divmod(np.arange(HW), W)
    rows = []
    for kh in range(K):
        for kw in range(K):
            dh, dw = kh - pad, kw - pad
            rows.append(((hh + dh >= 0) & (hh + dh < H) &
                         (ww + dw >= 0) & (ww + dw < W)).astype(np.float32))
    return jnp.asarray(np.stack(rows, axis=0))


# ---------------------------------------------------------------------------
# Kernel 1 (prepass): dense get_id_to_type_dict
#   tm[b, id]   = max over pixels of (type where cell_id == id else 0)
#   pres[b, id] = 1 if id occurs in batch element b
# ---------------------------------------------------------------------------
def _idtype_kernel(x_ref, tm_ref, pres_ref, *, C, HW):
    ids = x_ref[0, 0:1, :].astype(jnp.int32)        # (1, HW)
    tys = x_ref[0, 1:2, :]                          # (1, HW) f32
    c_iota = lax.broadcasted_iota(jnp.int32, (C, HW), 0)
    match = c_iota == ids                           # (C, HW)
    tm_ref[0] = jnp.max(jnp.where(match, tys, 0.0), axis=1, keepdims=True)    # (C, 1)
    pres_ref[0] = jnp.max(jnp.where(match, 1.0, 0.0), axis=1, keepdims=True)  # (C, 1)


def _idtype_map(x01f, C):
    B, _, HW = x01f.shape
    return pl.pallas_call(
        functools.partial(_idtype_kernel, C=C, HW=HW),
        grid=(B,),
        in_specs=[pl.BlockSpec((1, 2, HW), lambda b: (b, 0, 0))],
        out_specs=[
            pl.BlockSpec((1, C, 1), lambda b: (b, 0, 0)),
            pl.BlockSpec((1, C, 1), lambda b: (b, 0, 0)),
        ],
        out_shape=[
            jax.ShapeDtypeStruct((B, C, 1), jnp.float32),
            jax.ShapeDtypeStruct((B, C, 1), jnp.float32),
        ],
        compiler_params=pltpu.CompilerParams(dimension_semantics=("parallel",)),
    )(x01f)


# ---------------------------------------------------------------------------
# Kernel 2 (fused): one-hot -> conv stack -> final 1x1 -> postprocess/discretize
# Layout inside: (channels on sublane, H*W on lanes).
# ---------------------------------------------------------------------------
def _fused_forward_kernel(x_ref, mask_ref, ew_ref, eb_ref, pw_ref, pb_ref,
                          fw_ref, fb_ref, mt_ref, tmap_ref,
                          pid_ref, pty_ref, did_ref, dty_ref,
                          *, H, W, n_id, n_type, Ce, E, K, L):
    HW = H * W
    pad = (K - 1) // 2

    ids = x_ref[0, 0:1, :].astype(jnp.int32)        # (1, HW)
    tys = x_ref[0, 1:2, :].astype(jnp.int32)        # (1, HW)

    # one-hot(id) ++ one-hot(type), built directly channels-on-sublane (never hits HBM)
    c_iota = lax.broadcasted_iota(jnp.int32, (Ce, HW), 0)
    onehot = (((c_iota == ids) & (c_iota < n_id)) |
              ((c_iota == (tys + n_id)) & (c_iota >= n_id))).astype(jnp.float32)

    # Border masks loaded once; every conv layer reuses the same VMEM tile.
    m_all = mask_ref[...]                            # (K*K, HW) f32

    def im2col(act):
        # act: (Cin, HW) f32 -> (K*K*Cin, HW) bf16; spatial shifts via XLU rolls + border
        # masks (replaces per-layer jnp.pad + 9 shallow matmuls).  Rolls over the flat HW
        # axis may wrap rows, but those positions are exactly the ones the mask zeroes.
        pieces = []
        t = 0
        for kh in range(K):
            for kw in range(K):
                d = (kh - pad) * W + (kw - pad)
                rolled = act if d == 0 else pltpu.roll(act, shift=(-d) % HW, axis=1)
                pieces.append(rolled * m_all[t:t + 1, :])
                t += 1
        return jnp.concatenate(pieces, axis=0).astype(jnp.bfloat16)

    # encoder conv: one deep matmul, contraction K*K*Ce
    h = jnp.dot(ew_ref[...], im2col(onehot),
                preferred_element_type=jnp.float32) + eb_ref[...]
    h = jnp.maximum(h, 0.0)                         # (E, HW) f32

    # processor convs
    for l in range(L):
        h = jnp.dot(pw_ref[l], im2col(h),
                    preferred_element_type=jnp.float32) + pb_ref[l]
        h = jnp.maximum(h, 0.0)

    # final 1x1 conv -> id logits, f32 (C, HW)
    logits = jnp.dot(fw_ref[...], h.astype(jnp.bfloat16),
                     preferred_element_type=jnp.float32) + fb_ref[...]

    # softmax over ids (channel axis); max is computed once and reused for argmax
    lmax = jnp.max(logits, axis=0, keepdims=True)   # (1, HW)
    e = jnp.exp(logits - lmax)
    probs_id = e * pl.reciprocal(jnp.sum(e, axis=0, keepdims=True), approx=True)
    pid_ref[0] = probs_id + EPS

    # id probs -> type probs.  Reference computes softmax(log(pt + 1e-6)) over the type
    # axis; softmax(log(z)) == z / sum(z), so normalize directly (no log/exp EUP work).
    # Mt[b] is the dense id->type routing matrix.
    pt = jnp.dot(mt_ref[0], probs_id, preferred_element_type=jnp.float32) + 1e-6  # (C, HW)
    pty_ref[0] = pt * pl.reciprocal(jnp.sum(pt, axis=0, keepdims=True), approx=True) + EPS

    # discretize_cells: first argmax over ids (torch.max semantics) + type lookup
    cid = lax.broadcasted_iota(jnp.int32, logits.shape, 0)
    pred_id = jnp.min(jnp.where(logits == lmax, cid, logits.shape[0]),
                      axis=0, keepdims=True)        # (1, HW) int32
    did_ref[0] = pred_id
    tvec = tmap_ref[0]                              # (C, 1) f32
    dty_ref[0] = jnp.sum(jnp.where(cid == pred_id, tvec, 0.0),
                         axis=0, keepdims=True).astype(jnp.int32)


def _fused_forward(x01f, masks, params, Mt, tmap, *, H, W, n_id, n_type, Ce, E, K, L):
    B = x01f.shape[0]
    HW = H * W
    C = n_id
    T = K * K
    kernel = functools.partial(_fused_forward_kernel, H=H, W=W, n_id=n_id,
                               n_type=n_type, Ce=Ce, E=E, K=K, L=L)
    return pl.pallas_call(
        kernel,
        grid=(B,),
        in_specs=[
            pl.BlockSpec((1, 2, HW), lambda b: (b, 0, 0)),      # cell id / type grids
            pl.BlockSpec((T, HW), lambda b: (0, 0)),             # conv border masks
            pl.BlockSpec((E, T * Ce), lambda b: (0, 0)),          # encoder weight (packed)
            pl.BlockSpec((E, 1), lambda b: (0, 0)),
            pl.BlockSpec((L, E, T * E), lambda b: (0, 0, 0)),     # processor weights
            pl.BlockSpec((L, E, 1), lambda b: (0, 0, 0)),
            pl.BlockSpec((C, E), lambda b: (0, 0)),               # final 1x1 weight
            pl.BlockSpec((C, 1), lambda b: (0, 0)),
            pl.BlockSpec((1, C, C), lambda b: (b, 0, 0)),         # Mt (type x id)
            pl.BlockSpec((1, C, 1), lambda b: (b, 0, 0)),         # per-sample type map
        ],
        out_specs=[
            pl.BlockSpec((1, C, HW), lambda b: (b, 0, 0)),        # id probs   (lane-dense)
            pl.BlockSpec((1, C, HW), lambda b: (b, 0, 0)),        # type probs (lane-dense)
            pl.BlockSpec((1, 1, HW), lambda b: (b, 0, 0)),        # discretized id
            pl.BlockSpec((1, 1, HW), lambda b: (b, 0, 0)),        # discretized type
        ],
        out_shape=[
            jax.ShapeDtypeStruct((B, C, HW), jnp.float32),
            jax.ShapeDtypeStruct((B, C, HW), jnp.float32),
            jax.ShapeDtypeStruct((B, 1, HW), jnp.int32),
            jax.ShapeDtypeStruct((B, 1, HW), jnp.int32),
        ],
        compiler_params=pltpu.CompilerParams(dimension_semantics=("parallel",)),
    )(x01f, masks, params["enc_w"], params["enc_b"],
      params["proc_w"], params["proc_b"], params["final_w"], params["final_b"],
      Mt, tmap)


# ---------------------------------------------------------------------------
# Parameters (packed for the fused kernel) + full forward (tiny glue in plain JAX)
# ---------------------------------------------------------------------------
def init_params(key, *, emb_dim, max_num_cells, num_cell_types, num_layers, kernel_size):
    assert emb_dim % 8 == 0, "emb_dim must be a multiple of 8 (sublane alignment)"
    C_in = max_num_cells + num_cell_types
    Ce = _round_up(C_in, 8)
    K = kernel_size
    keys = jax.random.split(key, num_layers + 2)
    scale = 0.1

    def pack(w, cin, cin_pad):
        # (K, K, cin, cout) conv weight -> (cout, K*K*cin_pad) bf16 im2col weight
        if cin_pad > cin:
            w = jnp.pad(w, ((0, 0), (0, 0), (0, cin_pad - cin), (0, 0)))
        cout = w.shape[-1]
        return jnp.transpose(w, (3, 0, 1, 2)).reshape(cout, K * K * cin_pad).astype(jnp.bfloat16)

    enc_w = scale * jax.random.normal(keys[0], (K, K, C_in, emb_dim), jnp.float32)
    proc_w = [scale * jax.random.normal(keys[1 + l], (K, K, emb_dim, emb_dim), jnp.float32)
              for l in range(num_layers)]
    fin_w = scale * jax.random.normal(keys[-1], (1, 1, emb_dim, max_num_cells), jnp.float32)

    return {
        "enc_w": pack(enc_w, C_in, Ce),                                      # (E, K*K*Ce) bf16
        "enc_b": jnp.zeros((emb_dim, 1), jnp.float32),
        "proc_w": jnp.stack([pack(w, emb_dim, emb_dim) for w in proc_w]),    # (L, E, K*K*E) bf16
        "proc_b": jnp.zeros((num_layers, emb_dim, 1), jnp.float32),
        "final_w": jnp.transpose(fin_w[0, 0], (1, 0)).astype(jnp.bfloat16),  # (C, E) bf16
        "final_b": jnp.zeros((max_num_cells, 1), jnp.float32),
    }


def cellsort_simulator_forward(x, params, *, max_num_cells, num_cell_types, kernel_size=3):
    # x: (B, im_dim, H, W) NCHW; channel 0 = cell id, channel 1 = cell type
    B, _, H, W = x.shape
    HW = H * W
    C = max_num_cells
    E = params["enc_w"].shape[0]
    L = params["proc_w"].shape[0]
    Ce = _round_up(C + num_cell_types, 8)

    x01f = x[:, 0:2].reshape(B, 2, HW)          # lane-dense (B, 2, H*W)
    masks = _tap_masks(H, W, kernel_size)       # compile-time constant

    # ---- dense id_to_type_dict (prepass kernel + tiny cross-batch glue) ----
    tm, pres = _idtype_map(x01f, C)             # (B, C, 1) each
    type_map = tm[:, :, 0]                                                   # (B, C)
    present_any = (jnp.max(pres[:, :, 0], axis=0) > 0).astype(jnp.float32)   # (C,)
    t_iota = jnp.arange(C, dtype=jnp.int32)
    M = (present_any[None, :, None]
         * (jnp.round(type_map).astype(jnp.int32)[:, :, None]
            == t_iota[None, None, :]).astype(jnp.float32))                   # (B, id, type)
    Mt = jnp.transpose(M, (0, 2, 1))                                         # (B, type, id)

    # ---- fused 'unet' branch + postprocess_and_discretize ----
    probs_id, probs_ty, disc_id, disc_ty = _fused_forward(
        x01f, masks, params, Mt, tm, H=H, W=W, n_id=C, n_type=num_cell_types,
        Ce=Ce, E=E, K=kernel_size, L=L)

    additional_loss = jnp.float32(0.0)
    probs = jnp.stack([probs_id, probs_ty], axis=1)                 # (B, 2, C, HW)
    probs = jnp.transpose(probs, (0, 1, 3, 2)).reshape(B, 2, H, W, C)
    pred_disc = jnp.concatenate([disc_id, disc_ty], axis=1).reshape(B, 2, H, W)
    # probs: Categorical probabilities (+EPS); pred_disc: (B, 2, H, W) int32
    return probs, additional_loss, pred_disc, (type_map, present_any)


if __name__ == "__main__":
    B, H, W = 2, 16, 16
    im_dim = 5
    max_num_cells = 32
    num_cell_types = 4
    emb_dim = 16
    num_layers = 2
    kernel_size = 3

    key = jax.random.PRNGKey(0)
    k_id, k_rest, k_par = jax.random.split(key, 3)
    ids = jax.random.randint(k_id, (B, 1, H, W), 0, max_num_cells).astype(jnp.float32)
    types = jnp.mod(ids, num_cell_types)              # consistent id -> type mapping
    rest = jax.random.normal(k_rest, (B, im_dim - 2, H, W), jnp.float32)
    x = jnp.concatenate([ids, types, rest], axis=1)   # (B, im_dim, H, W)

    params = init_params(k_par, emb_dim=emb_dim, max_num_cells=max_num_cells,
                         num_cell_types=num_cell_types, num_layers=num_layers,
                         kernel_size=kernel_size)

    fwd = jax.jit(functools.partial(cellsort_simulator_forward,
                                    max_num_cells=max_num_cells,
                                    num_cell_types=num_cell_types,
                                    kernel_size=kernel_size))
    probs, additional_loss, pred_disc, id_to_type = fwd(x, params)
    jax.block_until_ready((probs, additional_loss, pred_disc, id_to_type))
    print("KERNEL_OK")
</pallas_src>

<mosaic_0001>
module attributes {stable_mosaic.version = 11 : i64} {
  func.func @_idtype_kernel(%arg0: i32, %arg1: memref<1x2x256xf32, #tpu.memory_space<vmem>>, %arg2: memref<1x32x1xf32, #tpu.memory_space<vmem>>, %arg3: memref<1x32x1xf32, #tpu.memory_space<vmem>>) attributes {dimension_semantics = [#tpu.dimension_semantics<parallel>], iteration_bounds = array<i64: 2>, scalar_prefetch = 0 : i64, scratch_operands = 0 : i64, tpu.core_type = #tpu.core_type<tc>, window_params = [{transform_indices = @transform_0, window_bounds = array<i64: 1, 2, 256>}, {transform_indices = @transform_1, window_bounds = array<i64: 1, 32, 1>}, {transform_indices = @transform_2, window_bounds = array<i64: 1, 32, 1>}]} {
    %c0 = arith.constant 0 : index
    %c0_0 = arith.constant 0 : index
    %c0_1 = arith.constant 0 : index
    %0 = vector.load %arg1[%c0, %c0_0, %c0_1] : memref<1x2x256xf32, #tpu.memory_space<vmem>>, vector<1x1x256xf32>
    %1 = vector.shape_cast %0 : vector<1x1x256xf32> to vector<1x256xf32>
    %2 = arith.fptosi %1 : vector<1x256xf32> to vector<1x256xi32>
    %c0_2 = arith.constant 0 : index
    %c1 = arith.constant 1 : index
    %c0_3 = arith.constant 0 : index
    %3 = vector.load %arg1[%c0_2, %c1, %c0_3] : memref<1x2x256xf32, #tpu.memory_space<vmem>>, vector<1x1x256xf32>
    %4 = vector.shape_cast %3 : vector<1x1x256xf32> to vector<1x256xf32>
    %5 = tpu.iota {dimensions = array<i32: 0>} : vector<32x256xi32>
    %6 = vector.broadcast %2 : vector<1x256xi32> to vector<32x256xi32>
    %7 = arith.cmpi eq, %5, %6 : vector<32x256xi32>
    %cst = arith.constant 0.000000e+00 : f32
    %8 = vector.shape_cast %4 : vector<1x256xf32> to vector<1x256xf32>
    %9 = vector.broadcast %8 : vector<1x256xf32> to vector<32x256xf32>
    %10 = vector.broadcast %cst : f32 to vector<32x256xf32>
    %11 = arith.select %7, %9, %10 : vector<32x256xi1>, vector<32x256xf32>
    %cst_4 = arith.constant dense<0xFF800000> : vector<32xf32>
    %12 = vector.multi_reduction <maximumf>, %11, %cst_4 [1] : vector<32x256xf32> to vector<32xf32>
    %13 = vector.shape_cast %12 : vector<32xf32> to vector<32x1xf32>
    %c0_5 = arith.constant 0 : index
    %c0_6 = arith.constant 0 : index
    %c0_7 = arith.constant 0 : index
    %14 = vector.load %arg2[%c0_5, %c0_6, %c0_7] : memref<1x32x1xf32, #tpu.memory_space<vmem>>, vector<1x32x1xf32>
    %15 = vector.shape_cast %14 : vector<1x32x1xf32> to vector<32x1xf32>
    %16 = vector.shape_cast %13 : vector<32x1xf32> to vector<1x32x1xf32>
    tpu.vector_store %arg2[%c0_5, %c0_6, %c0_7], %16 {strides = array<i32>} : memref<1x32x1xf32, #tpu.memory_space<vmem>>, vector<1x32x1xf32>,
    %cst_8 = arith.constant 1.000000e+00 : f32
    %cst_9 = arith.constant 0.000000e+00 : f32
    %17 = vector.broadcast %cst_8 : f32 to vector<32x256xf32>
    %18 = vector.broadcast %cst_9 : f32 to vector<32x256xf32>
    %19 = arith.select %7, %17, %18 : vector<32x256xi1>, vector<32x256xf32>
    %cst_10 = arith.constant dense<0xFF800000> : vector<32xf32>
    %20 = vector.multi_reduction <maximumf>, %19, %cst_10 [1] : vector<32x256xf32> to vector<32xf32>
    %21 = vector.shape_cast %20 : vector<32xf32> to vector<32x1xf32>
    %c0_11 = arith.constant 0 : index
    %c0_12 = arith.constant 0 : index
    %c0_13 = arith.constant 0 : index
    %22 = vector.load %arg3[%c0_11, %c0_12, %c0_13] : memref<1x32x1xf32, #tpu.memory_space<vmem>>, vector<1x32x1xf32>
    %23 = vector.shape_cast %22 : vector<1x32x1xf32> to vector<32x1xf32>
    %24 = vector.shape_cast %21 : vector<32x1xf32> to vector<1x32x1xf32>
    tpu.vector_store %arg3[%c0_11, %c0_12, %c0_13], %24 {strides = array<i32>} : memref<1x32x1xf32, #tpu.memory_space<vmem>>, vector<1x32x1xf32>,
    return
  }
  func.func @transform_0(%arg0: i32) -> (i32, i32, i32) {
    %c0_i32 = arith.constant 0 : i32
    %c0_i32_0 = arith.constant 0 : i32
    %c0_i32_1 = arith.constant 0 : i32
    return %arg0, %c0_i32, %c0_i32_0 : i32, i32, i32
  }
  func.func @transform_1(%arg0: i32) -> (i32, i32, i32) {
    %c0_i32 = arith.constant 0 : i32
    %c0_i32_0 = arith.constant 0 : i32
    %c0_i32_1 = arith.constant 0 : i32
    return %arg0, %c0_i32, %c0_i32_0 : i32, i32, i32
  }
  func.func @transform_2(%arg0: i32) -> (i32, i32, i32) {
    %c0_i32 = arith.constant 0 : i32
    %c0_i32_0 = arith.constant 0 : i32
    %c0_i32_1 = arith.constant 0 : i32
    return %arg0, %c0_i32, %c0_i32_0 : i32, i32, i32
  }
}

module attributes {stable_mosaic.version = 11 : i64} {
  func.func @_fused_forward_kernel(%arg0: i32, %arg1: memref<1x2x256xf32, #tpu.memory_space<vmem>>, %arg2: memref<9x256xf32, #tpu.memory_space<vmem>>, %arg3: memref<16x360xbf16, #tpu.memory_space<vmem>>, %arg4: memref<16x1xf32, #tpu.memory_space<vmem>>, %arg5: memref<2x16x144xbf16, #tpu.memory_space<vmem>>, %arg6: memref<2x16x1xf32, #tpu.memory_space<vmem>>, %arg7: memref<32x16xbf16, #tpu.memory_space<vmem>>, %arg8: memref<32x1xf32, #tpu.memory_space<vmem>>, %arg9: memref<1x32x32xf32, #tpu.memory_space<vmem>>, %arg10: memref<1x32x1xf32, #tpu.memory_space<vmem>>, %arg11: memref<1x32x256xf32, #tpu.memory_space<vmem>>, %arg12: memref<1x32x256xf32, #tpu.memory_space<vmem>>, %arg13: memref<1x1x256xi32, #tpu.memory_space<vmem>>, %arg14: memref<1x1x256xi32, #tpu.memory_space<vmem>>) attributes {dimension_semantics = [#tpu.dimension_semantics<parallel>], iteration_bounds = array<i64: 2>, scalar_prefetch = 0 : i64, scratch_operands = 0 : i64, tpu.core_type = #tpu.core_type<tc>, window_params = [{transform_indices = @transform_0, window_bounds = array<i64: 1, 2, 256>}, {pipeline_mode = #tpu.pipeline_mode<synchronous>, transform_indices = @transform_1, window_bounds = array<i64: 9, 256>}, {pipeline_mode = #tpu.pipeline_mode<synchronous>, transform_indices = @transform_2, window_bounds = array<i64: 16, 360>}, {pipeline_mode = #tpu.pipeline_mode<synchronous>, transform_indices = @transform_3, window_bounds = array<i64: 16, 1>}, {pipeline_mode = #tpu.pipeline_mode<synchronous>, transform_indices = @transform_4, window_bounds = array<i64: 2, 16, 144>}, {pipeline_mode = #tpu.pipeline_mode<synchronous>, transform_indices = @transform_5, window_bounds = array<i64: 2, 16, 1>}, {pipeline_mode = #tpu.pipeline_mode<synchronous>, transform_indices = @transform_6, window_bounds = array<i64: 32, 16>}, {pipeline_mode = #tpu.pipeline_mode<synchronous>, transform_indices = @transform_7, window_bounds = array<i64: 32, 1>}, {transform_indices = @transform_8, window_bounds = array<i64: 1, 32, 32>}, {transform_indices = @transform_9, window_bounds = array<i64: 1, 32, 1>}, {transform_indices = @transform_10, window_bounds = array<i64: 1, 32, 256>}, {transform_indices = @transform_11, window_bounds = array<i64: 1, 32, 256>}, {transform_indices = @transform_12, window_bounds = array<i64: 1, 1, 256>}, {transform_indices = @transform_13, window_bounds = array<i64: 1, 1, 256>}]} {
    %c0 = arith.constant 0 : index
    %c0_0 = arith.constant 0 : index
    %c0_1 = arith.constant 0 : index
    %0 = vector.load %arg1[%c0, %c0_0, %c0_1] : memref<1x2x256xf32, #tpu.memory_space<vmem>>, vector<1x1x256xf32>
    %1 = vector.shape_cast %0 : vector<1x1x256xf32> to vector<1x256xf32>
    %2 = arith.fptosi %1 : vector<1x256xf32> to vector<1x256xi32>
    %c0_2 = arith.constant 0 : index
    %c1 = arith.constant 1 : index
    %c0_3 = arith.constant 0 : index
    %3 = vector.load %arg1[%c0_2, %c1, %c0_3] : memref<1x2x256xf32, #tpu.memory_space<vmem>>, vector<1x1x256xf32>
    %4 = vector.shape_cast %3 : vector<1x1x256xf32> to vector<1x256xf32>
    %5 = arith.fptosi %4 : vector<1x256xf32> to vector<1x256xi32>
    %6 = tpu.iota {dimensions = array<i32: 0>} : vector<40x256xi32>
    %7 = vector.broadcast %2 : vector<1x256xi32> to vector<40x256xi32>
    %8 = arith.cmpi eq, %6, %7 : vector<40x256xi32>
    %c32_i32 = arith.constant 32 : i32
    %9 = vector.broadcast %c32_i32 : i32 to vector<40x256xi32>
    %10 = arith.cmpi slt, %6, %9 : vector<40x256xi32>
    %11 = arith.andi %8, %10 : vector<40x256xi1>
    %c32_i32_4 = arith.constant 32 : i32
    %12 = vector.broadcast %c32_i32_4 : i32 to vector<1x256xi32>
    %13 = arith.addi %5, %12 : vector<1x256xi32>
    %14 = vector.broadcast %13 : vector<1x256xi32> to vector<40x256xi32>
    %15 = arith.cmpi eq, %6, %14 : vector<40x256xi32>
    %c32_i32_5 = arith.constant 32 : i32
    %16 = vector.broadcast %c32_i32_5 : i32 to vector<40x256xi32>
    %17 = arith.cmpi sge, %6, %16 : vector<40x256xi32>
    %18 = arith.andi %15, %17 : vector<40x256xi1>
    %19 = arith.ori %11, %18 : vector<40x256xi1>
    %20 = arith.extui %19 : vector<40x256xi1> to vector<40x256xi32>
    %21 = arith.sitofp %20 : vector<40x256xi32> to vector<40x256xf32>
    %c0_6 = arith.constant 0 : index
    %c0_7 = arith.constant 0 : index
    %22 = vector.load %arg2[%c0_6, %c0_7] : memref<9x256xf32, #tpu.memory_space<vmem>>, vector<9x256xf32>
    %c0_8 = arith.constant 0 : index
    %c0_9 = arith.constant 0 : index
    %23 = vector.load %arg3[%c0_8, %c0_9] : memref<16x360xbf16, #tpu.memory_space<vmem>>, vector<16x360xbf16>
    %c17_i32 = arith.constant 17 : i32
    %24 = tpu.dynamic_rotate %21 by %c17_i32 dim 1 : vector<40x256xf32>, i32 -> vector<40x256xf32>
    %25 = vector.extract_strided_slice %22 {offsets = [0, 0], sizes = [1, 256], strides = [1, 1]} : vector<9x256xf32> to vector<1x256xf32>
    %26 = vector.broadcast %25 : vector<1x256xf32> to vector<40x256xf32>
    %27 = arith.mulf %24, %26 : vector<40x256xf32>
    %c16_i32 = arith.constant 16 : i32
    %28 = tpu.dynamic_rotate %21 by %c16_i32 dim 1 : vector<40x256xf32>, i32 -> vector<40x256xf32>
    %29 = vector.extract_strided_slice %22 {offsets = [1, 0], sizes = [1, 256], strides = [1, 1]} : vector<9x256xf32> to vector<1x256xf32>
    %30 = vector.broadcast %29 : vector<1x256xf32> to vector<40x256xf32>
    %31 = arith.mulf %28, %30 : vector<40x256xf32>
    %c15_i32 = arith.constant 15 : i32
    %32 = tpu.dynamic_rotate %21 by %c15_i32 dim 1 : vector<40x256xf32>, i32 -> vector<40x256xf32>
    %33 = vector.extract_strided_slice %22 {offsets = [2, 0], sizes = [1, 256], strides = [1, 1]} : vector<9x256xf32> to vector<1x256xf32>
    %34 = vector.broadcast %33 : vector<1x256xf32> to vector<40x256xf32>
    %35 = arith.mulf %32, %34 : vector<40x256xf32>
    %c1_i32 = arith.constant 1 : i32
    %36 = tpu.dynamic_rotate %21 by %c1_i32 dim 1 : vector<40x256xf32>, i32 -> vector<40x256xf32>
    %37 = vector.extract_strided_slice %22 {offsets = [3, 0], sizes = [1, 256], strides = [1, 1]} : vector<9x256xf32> to vector<1x256xf32>
    %38 = vector.broadcast %37 : vector<1x256xf32> to vector<40x256xf32>
    %39 = arith.mulf %36, %38 : vector<40x256xf32>
    %40 = vector.extract_strided_slice %22 {offsets = [4, 0], sizes = [1, 256], strides = [1, 1]} : vector<9x256xf32> to vector<1x256xf32>
    %41 = vector.broadcast %40 : vector<1x256xf32> to vector<40x256xf32>
    %42 = arith.mulf %21, %41 : vector<40x256xf32>
    %c255_i32 = arith.constant 255 : i32
    %43 = tpu.dynamic_rotate %21 by %c255_i32 dim 1 : vector<40x256xf32>, i32 -> vector<40x256xf32>
    %44 = vector.extract_strided_slice %22 {offsets = [5, 0], sizes = [1, 256], strides = [1, 1]} : vector<9x256xf32> to vector<1x256xf32>
    %45 = vector.broadcast %44 : vector<1x256xf32> to vector<40x256xf32>
    %46 = arith.mulf %43, %45 : vector<40x256xf32>
    %c241_i32 = arith.constant 241 : i32
    %47 = tpu.dynamic_rotate %21 by %c241_i32 dim 1 : vector<40x256xf32>, i32 -> vector<40x256xf32>
    %48 = vector.extract_strided_slice %22 {offsets = [6, 0], sizes = [1, 256], strides = [1, 1]} : vector<9x256xf32> to vector<1x256xf32>
    %49 = vector.broadcast %48 : vector<1x256xf32> to vector<40x256xf32>
    %50 = arith.mulf %47, %49 : vector<40x256xf32>
    %c240_i32 = arith.constant 240 : i32
    %51 = tpu.dynamic_rotate %21 by %c240_i32 dim 1 : vector<40x256xf32>, i32 -> vector<40x256xf32>
    %52 = vector.extract_strided_slice %22 {offsets = [7, 0], sizes = [1, 256], strides = [1, 1]} : vector<9x256xf32> to vector<1x256xf32>
    %53 = vector.broadcast %52 : vector<1x256xf32> to vector<40x256xf32>
    %54 = arith.mulf %51, %53 : vector<40x256xf32>
    %c239_i32 = arith.constant 239 : i32
    %55 = tpu.dynamic_rotate %21 by %c239_i32 dim 1 : vector<40x256xf32>, i32 -> vector<40x256xf32>
    %56 = vector.extract_strided_slice %22 {offsets = [8, 0], sizes = [1, 256], strides = [1, 1]} : vector<9x256xf32> to vector<1x256xf32>
    %57 = vector.broadcast %56 : vector<1x256xf32> to vector<40x256xf32>
    %58 = arith.mulf %55, %57 : vector<40x256xf32>
    %59 = tpu.concatenate %27, %31, %35, %39, %42, %46, %50, %54, %58 in 0 : vector<40x256xf32>, vector<40x256xf32>, vector<40x256xf32>, vector<40x256xf32>, vector<40x256xf32>, vector<40x256xf32>, vector<40x256xf32>, vector<40x256xf32>, vector<40x256xf32> -> vector<360x256xf32>
    %60 = arith.truncf %59 : vector<360x256xf32> to vector<360x256xbf16>
    %cst = arith.constant dense<0.000000e+00> : vector<16x256xf32>
    %61 = tpu.matmul %23, %60, %cst {dimension_numbers = #tpu.dot_dimension_numbers<[1], [0], [0], [1], [0, 0, 1, 1], [], []>} : vector<16x360xbf16>, vector<360x256xbf16>, vector<16x256xf32> -> vector<16x256xf32>
    %c0_10 = arith.constant 0 : index
    %c0_11 = arith.constant 0 : index
    %62 = vector.load %arg4[%c0_10, %c0_11] : memref<16x1xf32, #tpu.memory_space<vmem>>, vector<16x1xf32>
    %63 = vector.broadcast %62 : vector<16x1xf32> to vector<16x256xf32>
    %64 = arith.addf %61, %63 : vector<16x256xf32>
    %cst_12 = arith.constant 0.000000e+00 : f32
    %65 = vector.broadcast %cst_12 : f32 to vector<16x256xf32>
    %66 = arith.maximumf %64, %65 : vector<16x256xf32>
    %c0_13 = arith.constant 0 : index
    %c0_14 = arith.constant 0 : index
    %c0_15 = arith.constant 0 : index
    %67 = vector.load %arg5[%c0_13, %c0_14, %c0_15] : memref<2x16x144xbf16, #tpu.memory_space<vmem>>, vector<1x16x144xbf16>
    %68 = vector.shape_cast %67 : vector<1x16x144xbf16> to vector<16x144xbf16>
    %c17_i32_16 = arith.constant 17 : i32
    %69 = tpu.dynamic_rotate %66 by %c17_i32_16 dim 1 : vector<16x256xf32>, i32 -> vector<16x256xf32>
    %70 = vector.extract_strided_slice %22 {offsets = [0, 0], sizes = [1, 256], strides = [1, 1]} : vector<9x256xf32> to vector<1x256xf32>
    %71 = vector.broadcast %70 : vector<1x256xf32> to vector<16x256xf32>
    %72 = arith.mulf %69, %71 : vector<16x256xf32>
    %c16_i32_17 = arith.constant 16 : i32
    %73 = tpu.dynamic_rotate %66 by %c16_i32_17 dim 1 : vector<16x256xf32>, i32 -> vector<16x256xf32>
    %74 = vector.extract_strided_slice %22 {offsets = [1, 0], sizes = [1, 256], strides = [1, 1]} : vector<9x256xf32> to vector<1x256xf32>
    %75 = vector.broadcast %74 : vector<1x256xf32> to vector<16x256xf32>
    %76 = arith.mulf %73, %75 : vector<16x256xf32>
    %c15_i32_18 = arith.constant 15 : i32
    %77 = tpu.dynamic_rotate %66 by %c15_i32_18 dim 1 : vector<16x256xf32>, i32 -> vector<16x256xf32>
    %78 = vector.extract_strided_slice %22 {offsets = [2, 0], sizes = [1, 256], strides = [1, 1]} : vector<9x256xf32> to vector<1x256xf32>
    %79 = vector.broadcast %78 : vector<1x256xf32> to vector<16x256xf32>
    %80 = arith.mulf %77, %79 : vector<16x256xf32>
    %c1_i32_19 = arith.constant 1 : i32
    %81 = tpu.dynamic_rotate %66 by %c1_i32_19 dim 1 : vector<16x256xf32>, i32 -> vector<16x256xf32>
    %82 = vector.extract_strided_slice %22 {offsets = [3, 0], sizes = [1, 256], strides = [1, 1]} : vector<9x256xf32> to vector<1x256xf32>
    %83 = vector.broadcast %82 : vector<1x256xf32> to vector<16x256xf32>
    %84 = arith.mulf %81, %83 : vector<16x256xf32>
    %85 = vector.extract_strided_slice %22 {offsets = [4, 0], sizes = [1, 256], strides = [1, 1]} : vector<9x256xf32> to vector<1x256xf32>
    %86 = vector.broadcast %85 : vector<1x256xf32> to vector<16x256xf32>
    %87 = arith.mulf %66, %86 : vector<16x256xf32>
    %c255_i32_20 = arith.constant 255 : i32
    %88 = tpu.dynamic_rotate %66 by %c255_i32_20 dim 1 : vector<16x256xf32>, i32 -> vector<16x256xf32>
    %89 = vector.extract_strided_slice %22 {offsets = [5, 0], sizes = [1, 256], strides = [1, 1]} : vector<9x256xf32> to vector<1x256xf32>
    %90 = vector.broadcast %89 : vector<1x256xf32> to vector<16x256xf32>
    %91 = arith.mulf %88, %90 : vector<16x256xf32>
    %c241_i32_21 = arith.constant 241 : i32
    %92 = tpu.dynamic_rotate %66 by %c241_i32_21 dim 1 : vector<16x256xf32>, i32 -> vector<16x256xf32>
    %93 = vector.extract_strided_slice %22 {offsets = [6, 0], sizes = [1, 256], strides = [1, 1]} : vector<9x256xf32> to vector<1x256xf32>
    %94 = vector.broadcast %93 : vector<1x256xf32> to vector<16x256xf32>
    %95 = arith.mulf %92, %94 : vector<16x256xf32>
    %c240_i32_22 = arith.constant 240 : i32
    %96 = tpu.dynamic_rotate %66 by %c240_i32_22 dim 1 : vector<16x256xf32>, i32 -> vector<16x256xf32>
    %97 = vector.extract_strided_slice %22 {offsets = [7, 0], sizes = [1, 256], strides = [1, 1]} : vector<9x256xf32> to vector<1x256xf32>
    %98 = vector.broadcast %97 : vector<1x256xf32> to vector<16x256xf32>
    %99 = arith.mulf %96, %98 : vector<16x256xf32>
    %c239_i32_23 = arith.constant 239 : i32
    %100 = tpu.dynamic_rotate %66 by %c239_i32_23 dim 1 : vector<16x256xf32>, i32 -> vector<16x256xf32>
    %101 = vector.extract_strided_slice %22 {offsets = [8, 0], sizes = [1, 256], strides = [1, 1]} : vector<9x256xf32> to vector<1x256xf32>
    %102 = vector.broadcast %101 : vector<1x256xf32> to vector<16x256xf32>
    %103 = arith.mulf %100, %102 : vector<16x256xf32>
    %104 = tpu.concatenate %72, %76, %80, %84, %87, %91, %95, %99, %103 in 0 : vector<16x256xf32>, vector<16x256xf32>, vector<16x256xf32>, vector<16x256xf32>, vector<16x256xf32>, vector<16x256xf32>, vector<16x256xf32>, vector<16x256xf32>, vector<16x256xf32> -> vector<144x256xf32>
    %105 = arith.truncf %104 : vector<144x256xf32> to vector<144x256xbf16>
    %cst_24 = arith.constant dense<0.000000e+00> : vector<16x256xf32>
    %106 = tpu.matmul %68, %105, %cst_24 {dimension_numbers = #tpu.dot_dimension_numbers<[1], [0], [0], [1], [0, 0, 1, 1], [], []>} : vector<16x144xbf16>, vector<144x256xbf16>, vector<16x256xf32> -> vector<16x256xf32>
    %c0_25 = arith.constant 0 : index
    %c0_26 = arith.constant 0 : index
    %c0_27 = arith.constant 0 : index
    %107 = vector.load %arg6[%c0_25, %c0_26, %c0_27] : memref<2x16x1xf32, #tpu.memory_space<vmem>>, vector<1x16x1xf32>
    %108 = vector.shape_cast %107 : vector<1x16x1xf32> to vector<16x1xf32>
    %109 = vector.broadcast %108 : vector<16x1xf32> to vector<16x256xf32>
    %110 = arith.addf %106, %109 : vector<16x256xf32>
    %cst_28 = arith.constant 0.000000e+00 : f32
    %111 = vector.broadcast %cst_28 : f32 to vector<16x256xf32>
    %112 = arith.maximumf %110, %111 : vector<16x256xf32>
    %c1_29 = arith.constant 1 : index
    %c0_30 = arith.constant 0 : index
    %c0_31 = arith.constant 0 : index
    %113 = vector.load %arg5[%c1_29, %c0_30, %c0_31] : memref<2x16x144xbf16, #tpu.memory_space<vmem>>, vector<1x16x144xbf16>
    %114 = vector.shape_cast %113 : vector<1x16x144xbf16> to vector<16x144xbf16>
    %c17_i32_32 = arith.constant 17 : i32
    %115 = tpu.dynamic_rotate %112 by %c17_i32_32 dim 1 : vector<16x256xf32>, i32 -> vector<16x256xf32>
    %116 = vector.extract_strided_slice %22 {offsets = [0, 0], sizes = [1, 256], strides = [1, 1]} : vector<9x256xf32> to vector<1x256xf32>
    %117 = vector.broadcast %116 : vector<1x256xf32> to vector<16x256xf32>
    %118 = arith.mulf %115, %117 : vector<16x256xf32>
    %c16_i32_33 = arith.constant 16 : i32
    %119 = tpu.dynamic_rotate %112 by %c16_i32_33 dim 1 : vector<16x256xf32>, i32 -> vector<16x256xf32>
    %120 = vector.extract_strided_slice %22 {offsets = [1, 0], sizes = [1, 256], strides = [1, 1]} : vector<9x256xf32> to vector<1x256xf32>
    %121 = vector.broadcast %120 : vector<1x256xf32> to vector<16x256xf32>
    %122 = arith.mulf %119, %121 : vector<16x256xf32>
    %c15_i32_34 = arith.constant 15 : i32
    %123 = tpu.dynamic_rotate %112 by %c15_i32_34 dim 1 : vector<16x256xf32>, i32 -> vector<16x256xf32>
    %124 = vector.extract_strided_slice %22 {offsets = [2, 0], sizes = [1, 256], strides = [1, 1]} : vector<9x256xf32> to vector<1x256xf32>
    %125 = vector.broadcast %124 : vector<1x256xf32> to vector<16x256xf32>
    %126 = arith.mulf %123, %125 : vector<16x256xf32>
    %c1_i32_35 = arith.constant 1 : i32
    %127 = tpu.dynamic_rotate %112 by %c1_i32_35 dim 1 : vector<16x256xf32>, i32 -> vector<16x256xf32>
    %128 = vector.extract_strided_slice %22 {offsets = [3, 0], sizes = [1, 256], strides = [1, 1]} : vector<9x256xf32> to vector<1x256xf32>
    %129 = vector.broadcast %128 : vector<1x256xf32> to vector<16x256xf32>
    %130 = arith.mulf %127, %129 : vector<16x256xf32>
    %131 = vector.extract_strided_slice %22 {offsets = [4, 0], sizes = [1, 256], strides = [1, 1]} : vector<9x256xf32> to vector<1x256xf32>
    %132 = vector.broadcast %131 : vector<1x256xf32> to vector<16x256xf32>
    %133 = arith.mulf %112, %132 : vector<16x256xf32>
    %c255_i32_36 = arith.constant 255 : i32
    %134 = tpu.dynamic_rotate %112 by %c255_i32_36 dim 1 : vector<16x256xf32>, i32 -> vector<16x256xf32>
    %135 = vector.extract_strided_slice %22 {offsets = [5, 0], sizes = [1, 256], strides = [1, 1]} : vector<9x256xf32> to vector<1x256xf32>
    %136 = vector.broadcast %135 : vector<1x256xf32> to vector<16x256xf32>
    %137 = arith.mulf %134, %136 : vector<16x256xf32>
    %c241_i32_37 = arith.constant 241 : i32
    %138 = tpu.dynamic_rotate %112 by %c241_i32_37 dim 1 : vector<16x256xf32>, i32 -> vector<16x256xf32>
    %139 = vector.extract_strided_slice %22 {offsets = [6, 0], sizes = [1, 256], strides = [1, 1]} : vector<9x256xf32> to vector<1x256xf32>
    %140 = vector.broadcast %139 : vector<1x256xf32> to vector<16x256xf32>
    %141 = arith.mulf %138, %140 : vector<16x256xf32>
    %c240_i32_38 = arith.constant 240 : i32
    %142 = tpu.dynamic_rotate %112 by %c240_i32_38 dim 1 : vector<16x256xf32>, i32 -> vector<16x256xf32>
    %143 = vector.extract_strided_slice %22 {offsets = [7, 0], sizes = [1, 256], strides = [1, 1]} : vector<9x256xf32> to vector<1x256xf32>
    %144 = vector.broadcast %143 : vector<1x256xf32> to vector<16x256xf32>
    %145 = arith.mulf %142, %144 : vector<16x256xf32>
    %c239_i32_39 = arith.constant 239 : i32
    %146 = tpu.dynamic_rotate %112 by %c239_i32_39 dim 1 : vector<16x256xf32>, i32 -> vector<16x256xf32>
    %147 = vector.extract_strided_slice %22 {offsets = [8, 0], sizes = [1, 256], strides = [1, 1]} : vector<9x256xf32> to vector<1x256xf32>
    %148 = vector.broadcast %147 : vector<1x256xf32> to vector<16x256xf32>
    %149 = arith.mulf %146, %148 : vector<16x256xf32>
    %150 = tpu.concatenate %118, %122, %126, %130, %133, %137, %141, %145, %149 in 0 : vector<16x256xf32>, vector<16x256xf32>, vector<16x256xf32>, vector<16x256xf32>, vector<16x256xf32>, vector<16x256xf32>, vector<16x256xf32>, vector<16x256xf32>, vector<16x256xf32> -> vector<144x256xf32>
    %151 = arith.truncf %150 : vector<144x256xf32> to vector<144x256xbf16>
    %cst_40 = arith.constant dense<0.000000e+00> : vector<16x256xf32>
    %152 = tpu.matmul %114, %151, %cst_40 {dimension_numbers = #tpu.dot_dimension_numbers<[1], [0], [0], [1], [0, 0, 1, 1], [], []>} : vector<16x144xbf16>, vector<144x256xbf16>, vector<16x256xf32> -> vector<16x256xf32>
    %c1_41 = arith.constant 1 : index
    %c0_42 = arith.constant 0 : index
    %c0_43 = arith.constant 0 : index
    %153 = vector.load %arg6[%c1_41, %c0_42, %c0_43] : memref<2x16x1xf32, #tpu.memory_space<vmem>>, vector<1x16x1xf32>
    %154 = vector.shape_cast %153 : vector<1x16x1xf32> to vector<16x1xf32>
    %155 = vector.broadcast %154 : vector<16x1xf32> to vector<16x256xf32>
    %156 = arith.addf %152, %155 : vector<16x256xf32>
    %cst_44 = arith.constant 0.000000e+00 : f32
    %157 = vector.broadcast %cst_44 : f32 to vector<16x256xf32>
    %158 = arith.maximumf %156, %157 : vector<16x256xf32>
    %c0_45 = arith.constant 0 : index
    %c0_46 = arith.constant 0 : index
    %159 = vector.load %arg7[%c0_45, %c0_46] : memref<32x16xbf16, #tpu.memory_space<vmem>>, vector<32x16xbf16>
    %160 = arith.truncf %158 : vector<16x256xf32> to vector<16x256xbf16>
    %cst_47 = arith.constant dense<0.000000e+00> : vector<32x256xf32>
    %161 = tpu.matmul %159, %160, %cst_47 {dimension_numbers = #tpu.dot_dimension_numbers<[1], [0], [0], [1], [0, 0, 1, 1], [], []>} : vector<32x16xbf16>, vector<16x256xbf16>, vector<32x256xf32> -> vector<32x256xf32>
    %c0_48 = arith.constant 0 : index
    %c0_49 = arith.constant 0 : index
    %162 = vector.load %arg8[%c0_48, %c0_49] : memref<32x1xf32, #tpu.memory_space<vmem>>, vector<32x1xf32>
    %163 = vector.broadcast %162 : vector<32x1xf32> to vector<32x256xf32>
    %164 = arith.addf %161, %163 : vector<32x256xf32>
    %cst_50 = arith.constant dense<0xFF800000> : vector<256xf32>
    %165 = vector.multi_reduction <maximumf>, %164, %cst_50 [0] : vector<32x256xf32> to vector<256xf32>
    %166 = vector.shape_cast %165 : vector<256xf32> to vector<1x256xf32>
    %167 = vector.broadcast %166 : vector<1x256xf32> to vector<32x256xf32>
    %168 = arith.subf %164, %167 : vector<32x256xf32>
    %169 = math.exp %168 : vector<32x256xf32>
    %cst_51 = arith.constant dense<0.000000e+00> : vector<256xf32>
    %170 = vector.multi_reduction <add>, %169, %cst_51 [0] : vector<32x256xf32> to vector<256xf32>
    %171 = vector.shape_cast %170 : vector<256xf32> to vector<1x256xf32>
    %172 = tpu.reciprocal %171 {approx = true} : vector<1x256xf32> -> vector<1x256xf32>
    %173 = vector.broadcast %172 : vector<1x256xf32> to vector<32x256xf32>
    %174 = arith.mulf %169, %173 : vector<32x256xf32>
    %cst_52 = arith.constant 9.99999997E-7 : f32
    %175 = vector.broadcast %cst_52 : f32 to vector<32x256xf32>
    %176 = arith.addf %174, %175 : vector<32x256xf32>
    %c0_53 = arith.constant 0 : index
    %c0_54 = arith.constant 0 : index
    %c0_55 = arith.constant 0 : index
    %177 = vector.load %arg11[%c0_53, %c0_54, %c0_55] : memref<1x32x256xf32, #tpu.memory_space<vmem>>, vector<1x32x256xf32>
    %178 = vector.shape_cast %177 : vector<1x32x256xf32> to vector<32x256xf32>
    %179 = vector.shape_cast %176 : vector<32x256xf32> to vector<1x32x256xf32>
    tpu.vector_store %arg11[%c0_53, %c0_54, %c0_55], %179 {strides = array<i32>} : memref<1x32x256xf32, #tpu.memory_space<vmem>>, vector<1x32x256xf32>,
    %c0_56 = arith.constant 0 : index
    %c0_57 = arith.constant 0 : index
    %c0_58 = arith.constant 0 : index
    %180 = vector.load %arg9[%c0_56, %c0_57, %c0_58] : memref<1x32x32xf32, #tpu.memory_space<vmem>>, vector<1x32x32xf32>
    %181 = vector.shape_cast %180 : vector<1x32x32xf32> to vector<32x32xf32>
    %cst_59 = arith.constant dense<0.000000e+00> : vector<32x256xf32>
    %182 = tpu.matmul %181, %174, %cst_59 {dimension_numbers = #tpu.dot_dimension_numbers<[1], [0], [0], [1], [0, 0, 1, 1], [], []>} : vector<32x32xf32>, vector<32x256xf32>, vector<32x256xf32> -> vector<32x256xf32>
    %cst_60 = arith.constant 9.99999997E-7 : f32
    %183 = vector.broadcast %cst_60 : f32 to vector<32x256xf32>
    %184 = arith.addf %182, %183 : vector<32x256xf32>
    %cst_61 = arith.constant dense<0.000000e+00> : vector<256xf32>
    %185 = vector.multi_reduction <add>, %184, %cst_61 [0] : vector<32x256xf32> to vector<256xf32>
    %186 = vector.shape_cast %185 : vector<256xf32> to vector<1x256xf32>
    %187 = tpu.reciprocal %186 {approx = true} : vector<1x256xf32> -> vector<1x256xf32>
    %188 = vector.broadcast %187 : vector<1x256xf32> to vector<32x256xf32>
    %189 = arith.mulf %184, %188 : vector<32x256xf32>
    %cst_62 = arith.constant 9.99999997E-7 : f32
    %190 = vector.broadcast %cst_62 : f32 to vector<32x256xf32>
    %191 = arith.addf %189, %190 : vector<32x256xf32>
    %c0_63 = arith.constant 0 : index
    %c0_64 = arith.constant 0 : index
    %c0_65 = arith.constant 0 : index
    %192 = vector.load %arg12[%c0_63, %c0_64, %c0_65] : memref<1x32x256xf32, #tpu.memory_space<vmem>>, vector<1x32x256xf32>
    %193 = vector.shape_cast %192 : vector<1x32x256xf32> to vector<32x256xf32>
    %194 = vector.shape_cast %191 : vector<32x256xf32> to vector<1x32x256xf32>
    tpu.vector_store %arg12[%c0_63, %c0_64, %c0_65], %194 {strides = array<i32>} : memref<1x32x256xf32, #tpu.memory_space<vmem>>, vector<1x32x256xf32>,
    %195 = tpu.iota {dimensions = array<i32: 0>} : vector<32x256xi32>
    %196 = vector.broadcast %166 : vector<1x256xf32> to vector<32x256xf32>
    %197 = arith.cmpf oeq, %164, %196 : vector<32x256xf32>
    %c32_i32_66 = arith.constant 32 : i32
    %198 = vector.broadcast %c32_i32_66 : i32 to vector<32x256xi32>
    %199 = arith.select %197, %195, %198 : vector<32x256xi1>, vector<32x256xi32>
    %cst_67 = arith.constant dense<2147483647> : vector<256xi32>
    %200 = vector.multi_reduction <minsi>, %199, %cst_67 [0] : vector<32x256xi32> to vector<256xi32>
    %201 = vector.shape_cast %200 : vector<256xi32> to vector<1x256xi32>
    %c0_68 = arith.constant 0 : index
    %c0_69 = arith.constant 0 : index
    %c0_70 = arith.constant 0 : index
    %202 = vector.load %arg13[%c0_68, %c0_69, %c0_70] : memref<1x1x256xi32, #tpu.memory_space<vmem>>, vector<1x1x256xi32>
    %203 = vector.shape_cast %202 : vector<1x1x256xi32> to vector<1x256xi32>
    %204 = vector.shape_cast %201 : vector<1x256xi32> to vector<1x1x256xi32>
    tpu.vector_store %arg13[%c0_68, %c0_69, %c0_70], %204 {strides = array<i32>} : memref<1x1x256xi32, #tpu.memory_space<vmem>>, vector<1x1x256xi32>,
    %c0_71 = arith.constant 0 : index
    %c0_72 = arith.constant 0 : index
    %c0_73 = arith.constant 0 : index
    %205 = vector.load %arg10[%c0_71, %c0_72, %c0_73] : memref<1x32x1xf32, #tpu.memory_space<vmem>>, vector<1x32x1xf32>
    %206 = vector.shape_cast %205 : vector<1x32x1xf32> to vector<32x1xf32>
    %207 = vector.broadcast %201 : vector<1x256xi32> to vector<32x256xi32>
    %208 = arith.cmpi eq, %195, %207 : vector<32x256xi32>
    %cst_74 = arith.constant 0.000000e+00 : f32
    %209 = vector.shape_cast %206 : vector<32x1xf32> to vector<32x1xf32>
    %210 = vector.broadcast %209 : vector<32x1xf32> to vector<32x256xf32>
    %211 = vector.broadcast %cst_74 : f32 to vector<32x256xf32>
    %212 = arith.select %208, %210, %211 : vector<32x256xi1>, vector<32x256xf32>
    %cst_75 = arith.constant dense<0.000000e+00> : vector<256xf32>
    %213 = vector.multi_reduction <add>, %212, %cst_75 [0] : vector<32x256xf32> to vector<256xf32>
    %214 = vector.shape_cast %213 : vector<256xf32> to vector<1x256xf32>
    %215 = arith.fptosi %214 : vector<1x256xf32> to vector<1x256xi32>
    %c0_76 = arith.constant 0 : index
    %c0_77 = arith.constant 0 : index
    %c0_78 = arith.constant 0 : index
    %216 = vector.load %arg14[%c0_76, %c0_77, %c0_78] : memref<1x1x256xi32, #tpu.memory_space<vmem>>, vector<1x1x256xi32>
    %217 = vector.shape_cast %216 : vector<1x1x256xi32> to vector<1x256xi32>
    %218 = vector.shape_cast %215 : vector<1x256xi32> to vector<1x1x256xi32>
    tpu.vector_store %arg14[%c0_76, %c0_77, %c0_78], %218 {strides = array<i32>} : memref<1x1x256xi32, #tpu.memory_space<vmem>>, vector<1x1x256xi32>,
    return
  }
  func.func @transform_0(%arg0: i32) -> (i32, i32, i32) {
    %c0_i32 = arith.constant 0 : i32
    %c0_i32_0 = arith.constant 0 : i32
    %c0_i32_1 = arith.constant 0 : i32
    return %arg0, %c0_i32, %c0_i32_0 : i32, i32, i32
  }
  func.func @transform_1(%arg0: i32) -> (i32, i32) {
    %c0_i32 = arith.constant 0 : i32
    %c0_i32_0 = arith.constant 0 : i32
    %c0_i32_1 = arith.constant 0 : i32
    return %c0_i32, %c0_i32_0 : i32, i32
  }
  func.func @transform_2(%arg0: i32) -> (i32, i32) {
    %c0_i32 = arith.constant 0 : i32
    %c0_i32_0 = arith.constant 0 : i32
    %c0_i32_1 = arith.constant 0 : i32
    return %c0_i32, %c0_i32_0 : i32, i32
  }
  func.func @transform_3(%arg0: i32) -> (i32, i32) {
    %c0_i32 = arith.constant 0 : i32
    %c0_i32_0 = arith.constant 0 : i32
    %c0_i32_1 = arith.constant 0 : i32
    return %c0_i32, %c0_i32_0 : i32, i32
  }
  func.func @transform_4(%arg0: i32) -> (i32, i32, i32) {
    %c0_i32 = arith.constant 0 : i32
    %c0_i32_0 = arith.constant 0 : i32
    %c0_i32_1 = arith.constant 0 : i32
    %c0_i32_2 = arith.constant 0 : i32
    return %c0_i32, %c0_i32_0, %c0_i32_1 : i32, i32, i32
  }
  func.func @transform_5(%arg0: i32) -> (i32, i32, i32) {
    %c0_i32 = arith.constant 0 : i32
    %c0_i32_0 = arith.constant 0 : i32
    %c0_i32_1 = arith.constant 0 : i32
    %c0_i32_2 = arith.constant 0 : i32
    return %c0_i32, %c0_i32_0, %c0_i32_1 : i32, i32, i32
  }
  func.func @transform_6(%arg0: i32) -> (i32, i32) {
    %c0_i32 = arith.constant 0 : i32
    %c0_i32_0 = arith.constant 0 : i32
    %c0_i32_1 = arith.constant 0 : i32
    return %c0_i32, %c0_i32_0 : i32, i32
  }
  func.func @transform_7(%arg0: i32) -> (i32, i32) {
    %c0_i32 = arith.constant 0 : i32
    %c0_i32_0 = arith.constant 0 : i32
    %c0_i32_1 = arith.constant 0 : i32
    return %c0_i32, %c0_i32_0 : i32, i32
  }
  func.func @transform_8(%arg0: i32) -> (i32, i32, i32) {
    %c0_i32 = arith.constant 0 : i32
    %c0_i32_0 = arith.constant 0 : i32
    %c0_i32_1 = arith.constant 0 : i32
    return %arg0, %c0_i32, %c0_i32_0 : i32, i32, i32
  }
  func.func @transform_9(%arg0: i32) -> (i32, i32, i32) {
    %c0_i32 = arith.constant 0 : i32
    %c0_i32_0 = arith.constant 0 : i32
    %c0_i32_1 = arith.constant 0 : i32
    return %arg0, %c0_i32, %c0_i32_0 : i32, i32, i32
  }
  func.func @transform_10(%arg0: i32) -> (i32, i32, i32) {
    %c0_i32 = arith.constant 0 : i32
    %c0_i32_0 = arith.constant 0 : i32
    %c0_i32_1 = arith.constant 0 : i32
    return %arg0, %c0_i32, %c0_i32_0 : i32, i32, i32
  }
  func.func @transform_11(%arg0: i32) -> (i32, i32, i32) {
    %c0_i32 = arith.constant 0 : i32
    %c0_i32_0 = arith.constant 0 : i32
    %c0_i32_1 = arith.constant 0 : i32
    return %arg0, %c0_i32, %c0_i32_0 : i32, i32, i32
  }
  func.func @transform_12(%arg0: i32) -> (i32, i32, i32) {
    %c0_i32 = arith.constant 0 : i32
    %c0_i32_0 = arith.constant 0 : i32
    %c0_i32_1 = arith.constant 0 : i32
    return %arg0, %c0_i32, %c0_i32_0 : i32, i32, i32
  }
  func.func @transform_13(%arg0: i32) -> (i32, i32, i32) {
    %c0_i32 = arith.constant 0 : i32
    %c0_i32_0 = arith.constant 0 : i32
    %c0_i32_1 = arith.constant 0 : i32
    return %arg0, %c0_i32, %c0_i32_0 : i32, i32, i32
  }
}

</mosaic_0001>

<bundles_post_ra>
// kernel: cellsort_simulator_forward.2
= control target key start
LH: loop header
LB: loop body
LE: loop exit
PB: predicated region body
PF: predicated region fallthrough
CT: control target
= control target key end

     0   :  { %s382_s9 = smov 0   ;;  %s426_s0 = inlined_call_operand.vmem [shape: f32[2,2,256], index: 0, kind: input, shape index: {}]   ;;  %s427_s1 = inlined_call_operand.vmem [shape: f32[2,32,1], index: 1, kind: output, shape index: {0}]   ;;  %s428_s2 = inlined_call_operand.vmem [shape: f32[2,32,1], index: 2, kind: output, shape index: {1}]  }
   0x1 LB: > { %s330_s10 = sadd.s32 4294967295, %s364_s9   ;;  %p334_p0 = scmp.ge.s32.totalorder %s364_s9, 1  ;;  %s364_s9 = sphi %s382_s9, %s13_s9  }
   0x2   : > { %p115_p1 = scmp.lt.s32.totalorder %s364_s9, 3 }
   0x4   : > { %p116_p2 = pnand %p334_p0, %p115_p1 }
   0x5   : > { %p142_p3 = scmp.lt.s32.totalorder (!%p116_p2), %s330_s10, 1  ;;  %v161_v0 = vlaneseq (!%p116_p2)  ;;  %v366_v26 = vmov (!%p116_p2), 0.0   ;;  %vm213_vm8 = vcmask (!%p116_p2), 7168  }
   0x6   : > { %119 = sbr.rel (%p116_p2) target bundleno = 182 (0xb6), region = 24 }
   0x7   : > { %v162_v1 = vshrl.u32 (!%p116_p2), %v161_v0, 7 }
   0x9   : > { %v168_v3 = vsub.s32 (!%p116_p2), 0, %v162_v1  ;;  %v172_v4 = vsub.s32 (!%p116_p2), 1, %v162_v1  ;;  %v164_v8 = vadd.s32 (!%p116_p2), 16, %v162_v1  ;;  %v165_v13 = vadd.s32 (!%p116_p2), 24, %v162_v1 }
   0xa   : > { %v163_v14 = vadd.s32 (!%p116_p2), 8, %v162_v1 }
   0xd   : > { %s430_s10 = smov (!%p142_p3, %s330_s10), 1 }
   0xe   : > { %s344_s11 = sshll.u32 %s430_s10, 2  ;;  %s345_s15 = sshll.u32 %s430_s10, 5 }
   0xf   : > { %s146_s14 = scalar_lea.vmem %s426_s0, %s344_s11  ;;  %s151_s18 = scalar_lea.vmem %s427_s1, %s345_s15 }
  0x10   : > { %v157_v2 = vld [vmem:[%s146_s14] ss:$2 sm:$0x3]  ;;  %v341_v6 = vld [vmem:[%s146_s14 + $0x1] ss:$2 sm:$0x3]  ;;  %s156_s21 = scalar_lea.vmem %s428_s2, %s345_s15 }
  0x11   : > { %v347_v5 = vtrunc.f32 %v157_v2  ;;  %v186_v9 = vrot.slane %v341_v6, %v168_v3  ;;  %v190_v10 = vrot.slane %v341_v6, %v172_v4 }
  0x13   : > { %v348_v7 = vcvt.f32.s32 %v347_v5 }
  0x15   : > { %v169_v11 = vrot.slane %v348_v7, %v168_v3  ;;  %v173_v12 = vrot.slane %v348_v7, %v172_v4 }
  0x17   : > { %vm178_vm0 = vcmp.eq.s32.totalorder %v164_v8, %v169_v11  ;;  %vm179_vm1 = vcmp.eq.s32.totalorder %v164_v8, %v173_v12  ;;  %vm174_vm2 = vcmp.eq.s32.totalorder %v162_v1, %v169_v11  ;;  %vm175_vm3 = vcmp.eq.s32.totalorder %v162_v1, %v173_v12 }
  0x18   : > { %v197_v15 = vsel %vm178_vm0, %v186_v9, 0.0  ;;  %v198_v16 = vsel %vm179_vm1, %v190_v10, 0.0  ;;  %v193_v17 = vsel %vm174_vm2, %v186_v9, 0.0  ;;  %v194_v18 = vsel %vm175_vm3, %v190_v10, 0.0 }
  0x19   : > { %v207_v19 = vmax.f32 %v197_v15, %v198_v16  ;;  %v201_v20 = vmax.f32 %v193_v17, %v194_v18  ;;  %vm180_vm4 = vcmp.eq.s32.totalorder %v165_v13, %v169_v11  ;;  %vm181_vm5 = vcmp.eq.s32.totalorder %v165_v13, %v173_v12 }
  0x1a   : > { %v199_v21 = vsel %vm180_vm4, %v186_v9, 0.0  ;;  %v200_v22 = vsel %vm181_vm5, %v190_v10, 0.0  ;;  %vm176_vm6 = vcmp.eq.s32.totalorder %v163_v14, %v169_v11  ;;  %vm177_vm7 = vcmp.eq.s32.totalorder %v163_v14, %v173_v12 }
  0x1b   : > { %208 = vmax.xlane.f32.xlu1 %v207_v19  ;;  %202 = vmax.xlane.f32.xlu0 %v201_v20  ;;  %v210_v23 = vmax.f32 %v199_v21, %v200_v22  ;;  %v195_v24 = vsel %vm176_vm6, %v186_v9, 0.0  ;;  %v196_v25 = vsel %vm177_vm7, %v190_v10, 0.0  ;;  %v220_v27 = vsel %vm176_vm6, 1.0, %v366_v26 }
  0x1c   : > { %v204_v28 = vmax.f32 %v195_v24, %v196_v25  ;;  %v221_v29 = vsel %vm177_vm7, 1.0, %v366_v26  ;;  %v218_v30 = vsel %vm174_vm2, 1.0, %v366_v26  ;;  %v219_v31 = vsel %vm175_vm3, 1.0, %v366_v26 }
  0x1d   : > { %v229_v32 = vmax.f32 %v220_v27, %v221_v29  ;;  %v226_v33 = vmax.f32 %v218_v30, %v219_v31  ;;  %v224_v34 = vsel %vm180_vm4, 1.0, %v366_v26  ;;  %v225_v35 = vsel %vm181_vm5, 1.0, %v366_v26 }
  0x1e   : > { %v222_v36 = vsel %vm178_vm0, 1.0, %v366_v26  ;;  %v223_v37 = vsel %vm179_vm1, 1.0, %v366_v26  ;;  %v235_v38 = vmax.f32 %v224_v34, %v225_v35 }
  0x1f   : > { %211 = vmax.xlane.f32.xlu1 %v210_v23  ;;  %205 = vmax.xlane.f32.xlu0 %v204_v28  ;;  %v232_v39 = vmax.f32 %v222_v36, %v223_v37 }
  0x23   : > { %230 = vmax.xlane.f32.xlu1 %v229_v32  ;;  %227 = vmax.xlane.f32.xlu0 %v226_v33 }
  0x27   : > { %236 = vmax.xlane.f32.xlu1 %v235_v38  ;;  %233 = vmax.xlane.f32.xlu0 %v232_v39 }
  0xa8   : > { %v209_v40 = vpop.xlane.xlu1 %208  ;;  %v203_v41 = vpop.xlane.xlu0 %202 }
  0xa9   : > { %216 = vst.msk [vmem:[%s151_s18 + $0x10] sm:$0xff] %vm213_vm8, %v209_v40  ;;  %214 = vst.msk [vmem:[%s151_s18] sm:$0xff] %vm213_vm8, %v203_v41 }
  0xac   : > { %v212_v42 = vpop.xlane.xlu1 %211  ;;  %v206_v43 = vpop.xlane.xlu0 %205 }
  0xad   : > { %217 = vst.msk [vmem:[%s151_s18 + $0x18] sm:$0xff] %vm213_vm8, %v212_v42  ;;  %215 = vst.msk [vmem:[%s151_s18 + $0x8] sm:$0xff] %vm213_vm8, %v206_v43 }
  0xb0   : > { %v231_v44 = vpop.xlane.xlu1 %230  ;;  %v228_v45 = vpop.xlane.xlu0 %227 }
  0xb1   : > { %239 = vst.msk [vmem:[%s156_s21 + $0x8] sm:$0xff] %vm213_vm8, %v231_v44  ;;  %238 = vst.msk [vmem:[%s156_s21] sm:$0xff] %vm213_vm8, %v228_v45 }
  0xb4   : > { %v237_v46 = vpop.xlane.xlu1 %236  ;;  %v234_v47 = vpop.xlane.xlu0 %233 }
  0xb5   : > { %241 = vst.msk [vmem:[%s156_s21 + $0x18] sm:$0xff] %vm213_vm8, %v237_v46  ;;  %240 = vst.msk [vmem:[%s156_s21 + $0x10] sm:$0xff] %vm213_vm8, %v234_v47 }
  0xb6 PF: > { %s13_s9 = sadd.s32 1, %s364_s9  }
  0xb7   : > { %p10_p4 = scmp.ge.s32.totalorder %s13_s9, 4  }
  0xb9   :  { %12 = sbr.rel (!%p10_p4) target bundleno = 1 (0x1), region = 67 }

// kernel: cellsort_simulator_forward.3
= control target key start
LH: loop header
LB: loop body
LE: loop exit
PB: predicated region body
PF: predicated region fallthrough
CT: control target
= control target key end

     0   :  { %s2749_s25 = smov 0   ;;  %s3820_s0 = inlined_call_operand.vmem [shape: f32[2,2,256], index: 0, kind: input, shape index: {}]   ;;  %s3821_s1 = inlined_call_operand.vmem [shape: f32[9,256], index: 1, kind: input, shape index: {}]   ;;  %s3822_s2 = inlined_call_operand.vmem [shape: bf16[16,360], index: 2, kind: input, shape index: {}]   ;;  %s3823_s3 = inlined_call_operand.vmem [shape: f32[16,1], index: 3, kind: input, shape index: {}]   ;;  %s3824_s4 = inlined_call_operand.vmem [shape: bf16[2,16,144], index: 4, kind: input, shape index: {}]   ;;  %s3825_s5 = inlined_call_operand.vmem [shape: f32[2,16,1], index: 5, kind: input, shape index: {}]   ;;  %s3826_s6 = inlined_call_operand.vmem [shape: bf16[32,16], index: 6, kind: input, shape index: {}]   ;;  %s3827_s7 = inlined_call_operand.vmem [shape: f32[32,1], index: 7, kind: input, shape index: {}]   ;;  %s3828_s8 = inlined_call_operand.vmem [shape: f32[2,32,32], index: 8, kind: input, shape index: {}]   ;;  %s3829_s9 = inlined_call_operand.vmem [shape: f32[2,32,1], index: 9, kind: input, shape index: {}]   ;;  %s3830_s10 = inlined_call_operand.vmem [shape: f32[2,32,256], index: 10, kind: output, shape index: {0}]   ;;  %s3831_s11 = inlined_call_operand.vmem [shape: f32[2,32,256], index: 11, kind: output, shape index: {1}]   ;;  %s3832_s12 = inlined_call_operand.vmem [shape: s32[2,1,256], index: 12, kind: output, shape index: {2}]   ;;  %s3833_s13 = inlined_call_operand.vmem [shape: s32[2,1,256], index: 13, kind: output, shape index: {3}]  }
   0x1 LB: > { %s2317_s26 = sadd.s32 4294967295, %s2666_s25   ;;  %p2321_p0 = scmp.ge.s32.totalorder %s2666_s25, 1  ;;  %s2666_s25 = sphi %s2749_s25, %s24_s25  }
   0x2   : > { %p414_p1 = scmp.lt.s32.totalorder %s2666_s25, 3 }
   0x4   : > { %p415_p2 = pnand %p2321_p0, %p414_p1 }
   0x5   : > { %p481_p3 = scmp.lt.s32.totalorder (!%p415_p2), %s2317_s26, 1  ;;  %v520_v0 = vlaneseq (!%p415_p2)  ;;  %v2668_v17 = vmov (!%p415_p2), 0.0   ;;  %s2669_s14 = smov (!%p415_p2), 17   ;;  %v2862_v41 = vld [vmem:[%s3821_s1 + $0x8] sm:$0xff] (!%p415_p2)  ;;  %v2867_v42 = vld [vmem:[%s3821_s1] sm:$0xff] (!%p415_p2)  ;;  %v2677_v58 = vmov (!%p415_p2), 0  }
   0x6   : > { %418 = sbr.rel (%p415_p2) target bundleno = 1826 (0x722), region = 60  ;;  %s2670_s15 = smov (!%p415_p2), 16   ;;  %v2626_v57 = vld [vmem:[%s3822_s2 + $0x4] ss:$12 sps:$4 sm:$0xff] (!%p415_p2)   ;;  %2622 = vset.pattern.permute.xlu0 (!%p415_p2), %v2677_v58  ;;  %2623 = vset.pattern.permute.xlu1 (!%p415_p2), %v2677_v58  ;;  %v1090_v60 = vld [vmem:[%s3823_s3 + $0x8] sm:$0xff] (!%p415_p2) }
   0x7   : > { %v2760_v1 = vshrl.u32 (!%p415_p2), %v520_v0, 7  ;;  %s2671_s16 = smov (!%p415_p2), 15   ;;  %s2672_s17 = smov (!%p415_p2), 1   ;;  %1159 = vmatprep.mubr.bf16.mxu0 (!%p415_p2), %v2626_v57  ;;  %v1089_v59 = vld [vmem:[%s3823_s3] sm:$0xff] (!%p415_p2)  ;;  %v2953_v61 = vand.u32 (!%p415_p2), 127, %v520_v0 }
   0x8   : > { %s2673_s22 = smov (!%p415_p2), 127   ;;  %s2674_s23 = smov (!%p415_p2), 113  }
   0x9   : > { %v2767_v5 = vsub.s32 (!%p415_p2), 0, %v2760_v1  ;;  %v2770_v6 = vsub.s32 (!%p415_p2), 1, %v2760_v1  ;;  %v2773_v8 = vadd.s32 (!%p415_p2), 16, %v2760_v1  ;;  %v2776_v10 = vadd.s32 (!%p415_p2), 24, %v2760_v1  ;;  %s2675_s28 = smov (!%p415_p2), 112   ;;  %s2676_s29 = smov (!%p415_p2), 111  }
   0xa   : > { %v2779_v11 = vadd.s32 (!%p415_p2), 8, %v2760_v1  ;;  %v525_v15 = vadd.s32 (!%p415_p2), 32, %v2760_v1  ;;  %v831_v40 = vsub.s32 (!%p415_p2), 4, %v2760_v1  ;;  %vm653_vm10 = vcmp.lt.s32.totalorder (!%p415_p2), %v2953_v61, 17 }
   0xb   : > { %vm702_vm11 = vcmp.lt.s32.totalorder (!%p415_p2), %v2953_v61, 16  ;;  %vm751_vm12 = vcmp.lt.s32.totalorder (!%p415_p2), %v2953_v61, 15  ;;  %vm800_vm13 = vcmp.lt.s32.totalorder (!%p415_p2), %v2953_v61, 1  ;;  %vm867_vm14 = vcmp.lt.s32.totalorder (!%p415_p2), %v2953_v61, 127 }
   0xc   : > { %v2872_v43 = vrot.slane (!%p415_p2), %v2862_v41, %v831_v40  ;;  %v2875_v44 = vrot.slane (!%p415_p2), %v2867_v42, %v831_v40  ;;  %vm916_vm15 = vcmp.lt.s32.totalorder (!%p415_p2), %v2953_v61, 113 }
   0xd   : > { %s3837_s26 = smov (!%p481_p3, %s2317_s26), 1 }
   0xe   : > { %s2372_s27 = sshll.u32 %s3837_s26, 2  ;;  %s2373_s19 = sshll.u32 %s3837_s26, 5 }
   0xf   : > { %s485_s30 = scalar_lea.vmem %s3820_s0, %s2372_s27  ;;  %s2375_s24 = sshll.u32 %s3837_s26, 6 }
  0x10   : > { %v515_v2 = vld [vmem:[%s485_s30] ss:$2 sm:$0x3]  ;;  %v2334_v3 = vld [vmem:[%s485_s30 + $0x1] ss:$2 sm:$0x3]  ;;  %s505_s20 = scalar_lea.vmem %s3831_s11, %s2375_s24 }
  0x11   : > { %v2395_v4 = vtrunc.f32 %v515_v2  ;;  %v2397_v7 = vtrunc.f32 %v2334_v3  ;;  %v764_v2 = vsub.s32 2, %v2760_v1  ;;  %v2959_v3 = vrot.slane %v2862_v41, %v2767_v5 }
  0x13   : > { %v2396_v9 = vcvt.f32.s32 %v2395_v4  ;;  %v2398_v12 = vcvt.f32.s32 %v2397_v7  ;;  %v2963_v4 = vrot.slane %v2867_v42, %v2767_v5  ;;  %v2968_v7 = vrot.slane %v2862_v41, %v2770_v6 }
  0x15   : > { %v529_v13 = vrot.slane %v2396_v9, %v2767_v5  ;;  %v533_v14 = vrot.slane %v2396_v9, %v2770_v6  ;;  %v559_v16 = vadd.s32 32, %v2398_v12 }
  0x17   : > { %vm538_vm0 = vcmp.eq.s32.totalorder %v2773_v8, %v529_v13  ;;  %vm540_vm1 = vcmp.eq.s32.totalorder %v2776_v10, %v529_v13  ;;  %vm534_vm2 = vcmp.eq.s32.totalorder %v2760_v1, %v529_v13  ;;  %vm536_vm3 = vcmp.eq.s32.totalorder %v2779_v11, %v529_v13 }
  0x18   : > { %v2789_v18 = vsel %vm538_vm0, 1.0, %v2668_v17  ;;  %v2792_v19 = vsel %vm540_vm1, 1.0, %v2668_v17  ;;  %v2335_v20 = vsel %vm534_vm2, 1.0, %v2668_v17  ;;  %v2337_v21 = vsel %vm536_vm3, 1.0, %v2668_v17 }
  0x19   : > { %v2798_v22 = vpack.i.bf16 %v2792_v19, %v2789_v18  ;;  %v2800_v23 = vpack.i.bf16 %v2337_v21, %v2335_v20  ;;  %vm539_vm4 = vcmp.eq.s32.totalorder %v2773_v8, %v533_v14  ;;  %vm541_vm5 = vcmp.eq.s32.totalorder %v2776_v10, %v533_v14 }
  0x1a   : > { %v2340_v24 = vsel %vm539_vm4, 1.0, %v2668_v17  ;;  %v2342_v25 = vsel %vm541_vm5, 1.0, %v2668_v17  ;;  %vm535_vm6 = vcmp.eq.s32.totalorder %v2760_v1, %v533_v14  ;;  %vm537_vm7 = vcmp.eq.s32.totalorder %v2779_v11, %v533_v14 }
  0x1b   : > { %2433 = vrot.lane.b32.xlu1 %v2798_v22, %s2669_s14  ;;  %2423 = vrot.lane.b32.xlu0 %v2800_v23, %s2669_s14  ;;  %v2812_v26 = vpack.i.bf16 %v2342_v25, %v2340_v24  ;;  %v2336_v27 = vsel %vm535_vm6, 1.0, %v2668_v17  ;;  %v2338_v28 = vsel %vm537_vm7, 1.0, %v2668_v17  ;;  %v563_v29 = vrot.slane %v559_v16, %v2767_v5 }
  0x1c   : > { %v2817_v30 = vpack.i.bf16 %v2338_v28, %v2336_v27  ;;  %v567_v31 = vrot.slane %v559_v16, %v2770_v6  ;;  %v2442_v33 = vpack.i.bf16 %v2336_v27, %v2335_v20  ;;  %v2457_v36 = vpack.i.bf16 %v2340_v24, %v2338_v28 }
  0x1d   : > { %vm576_vm8 = vcmp.eq.s32.totalorder %v525_v15, %v563_v29  ;;  %v2452_v37 = vpack.i.bf16 %v2789_v18, %v2337_v21  ;;  %v2878_v45 = vmul.f32 %v2336_v27, %v2872_v43  ;;  %v2881_v46 = vmul.f32 %v2338_v28, %v2872_v43 }
  0x1e   : > { %vm577_vm9 = vcmp.eq.s32.totalorder %v525_v15, %v567_v31  ;;  %v2821_v32 = vsel %vm576_vm8, 1.0, %v2668_v17  ;;  %v2884_v47 = vmul.f32 %v2335_v20, %v2875_v44  ;;  %v2887_v48 = vmul.f32 %v2337_v21, %v2875_v44 }
  0x1f   : > { %2438 = vrot.lane.b32.xlu1 %v2812_v26, %s2669_s14  ;;  %2428 = vrot.lane.b32.xlu0 %v2817_v30, %s2669_s14  ;;  %v2828_v34 = vsel %vm577_vm9, 1.0, %v2668_v17  ;;  %v2462_v39 = vpack.i.bf16 %v2821_v32, %v2792_v19  ;;  %v2890_v49 = vmul.f32 %v2340_v24, %v2872_v43  ;;  %v2893_v50 = vmul.f32 %v2342_v25, %v2872_v43 }
  0x20   : > { %v2832_v35 = vpack.i.bf16 %v2828_v34, %v2821_v32  ;;  %v2472_v38 = vpack.i.bf16 %v2828_v34, %v2342_v25  ;;  %v1064_v51 = vpack.c.bf16 %v2881_v46, %v2878_v45  ;;  %v1063_v52 = vpack.c.bf16 %v2887_v48, %v2884_v47 }
  0x21   : > { %v2903_v53 = vmul.f32 %v2789_v18, %v2875_v44  ;;  %v1066_v54 = vpack.c.bf16 %v2893_v50, %v2890_v49  ;;  %v2909_v55 = vmul.f32 %v2792_v19, %v2875_v44  ;;  %v2972_v13 = vrot.slane %v2867_v42, %v2770_v6 }
  0x22   : > { %v2975_v14 = vrot.slane %v2862_v41, %v764_v2  ;;  %v2978_v15 = vrot.slane %v2867_v42, %v764_v2  ;;  %v813_v5 = vsub.s32 3, %v2760_v1  ;;  %vm965_vm0 = vcmp.lt.s32.totalorder %v2953_v61, 112 }
  0x23   : > { %2443 = vrot.lane.b32.xlu1 %v2442_v33, %s2670_s15  ;;  %2448 = vrot.lane.b32.xlu0 %v2832_v35, %s2669_s14  ;;  %v1065_v56 = vpack.c.bf16 %v2909_v55, %v2903_v53  ;;  %vm1014_vm1 = vcmp.lt.s32.totalorder %v2953_v61, 111  ;;  %vm1120_vm2 = vcmask 1043456   ;;  %vm1116_vm3 = vcmask 850944  }
  0x24   : > { %vm1390_vm4 = vcmask 130048  }
  0x27   : > { %2458 = vrot.lane.b32.xlu1 %v2457_v36, %s2670_s15  ;;  %2453 = vrot.lane.b32.xlu0 %v2452_v37, %s2670_s15 }
  0x2b   : > { %2473 = vrot.lane.b32.xlu1 %v2472_v38, %s2670_s15  ;;  %2463 = vrot.lane.b32.xlu0 %v2462_v39, %s2670_s15 }
  0x2f   : > { %2478 = vrot.lane.b32.xlu1 %v2817_v30, %s2671_s16  ;;  %2468 = vrot.lane.b32.xlu0 %v2800_v23, %s2671_s16 }
  0x33   : > { %2488 = vrot.lane.b32.xlu1 %v2812_v26, %s2671_s16  ;;  %2483 = vrot.lane.b32.xlu0 %v2798_v22, %s2671_s16 }
  0x37   : > { %2498 = vrot.lane.b32.xlu1 %v2442_v33, %s2672_s17  ;;  %2493 = vrot.lane.b32.xlu0 %v2832_v35, %s2671_s16 }
  0x3b   : > { %2508 = vrot.lane.b32.xlu1 %v2457_v36, %s2672_s17  ;;  %2503 = vrot.lane.b32.xlu0 %v2452_v37, %s2672_s17 }
  0x3f   : > { %2518 = vrot.lane.b32.xlu1 %v2472_v38, %s2672_s17  ;;  %2513 = vrot.lane.b32.xlu0 %v2462_v39, %s2672_s17 }
  0x43   : > { %2523 = vrot.lane.b32.xlu0 %v2442_v33, %s2673_s22  ;;  %2528 = vrot.lane.b32.xlu1 %v2452_v37, %s2673_s22 }
  0x47   : > { %2533 = vrot.lane.b32.xlu0 %v2457_v36, %s2673_s22  ;;  %2538 = vrot.lane.b32.xlu1 %v2462_v39, %s2673_s22 }
  0x4b   : > { %2543 = vrot.lane.b32.xlu0 %v2472_v38, %s2673_s22  ;;  %2548 = vrot.lane.b32.xlu1 %v2800_v23, %s2674_s23 }
  0x4f   : > { %2553 = vrot.lane.b32.xlu0 %v2817_v30, %s2674_s23  ;;  %2558 = vrot.lane.b32.xlu1 %v2798_v22, %s2674_s23 }
  0x53   : > { %2563 = vrot.lane.b32.xlu0 %v2812_v26, %s2674_s23  ;;  %2568 = vrot.lane.b32.xlu1 %v2832_v35, %s2674_s23 }
  0x57   : > { %2573 = vrot.lane.b32.xlu0 %v2442_v33, %s2675_s28  ;;  %2578 = vrot.lane.b32.xlu1 %v2452_v37, %s2675_s28 }
  0x5b   : > { %2583 = vrot.lane.b32.xlu0 %v2457_v36, %s2675_s28  ;;  %2588 = vrot.lane.b32.xlu1 %v2462_v39, %s2675_s28 }
  0x5f   : > { %2593 = vrot.lane.b32.xlu0 %v2472_v38, %s2675_s28  ;;  %2598 = vrot.lane.b32.xlu1 %v2800_v23, %s2676_s29 }
  0x63   : > { %2603 = vrot.lane.b32.xlu0 %v2817_v30, %s2676_s29  ;;  %2608 = vrot.lane.b32.xlu1 %v2798_v22, %s2676_s29 }
  0x67   : > { %2613 = vrot.lane.b32.xlu0 %v2812_v26, %s2676_s29  ;;  %2618 = vrot.lane.b32.xlu1 %v2832_v35, %s2676_s29 }
  0x6b   : > { %1093 = vperm.xlu0 %2622, %v1089_v59   ;;  %1098 = vperm.xlu1 %2623, %v1090_v60  }
  0x8d   : > { %v2434_v62 = vpop.permute.xlu1 %2433  ;;  %v2424_v63 = vpop.permute.xlu0 %2423 }
  0x8e   : > { %v2426_v16 = vunpack.i.h.bf16 %v2424_v63  ;;  %v2425_v18 = vunpack.i.l.bf16 %v2424_v63  ;;  %v2436_v21 = vunpack.i.h.bf16 %v2434_v62  ;;  %v2435_v22 = vunpack.i.l.bf16 %v2434_v62 }
  0x91   : > { %v2439_v9 = vpop.permute.xlu1 %2438  ;;  %v2429_v12 = vpop.permute.xlu0 %2428 }
  0x92   : > { %v2431_v19 = vunpack.i.h.bf16 %v2429_v12  ;;  %v2430_v20 = vunpack.i.l.bf16 %v2429_v12  ;;  %v2441_v23 = vunpack.i.h.bf16 %v2439_v9  ;;  %v2440_v24 = vunpack.i.l.bf16 %v2439_v9 }
  0x94   : > { %v654_v6 = vsel %vm653_vm10, %v2425_v18, %v2430_v20  ;;  %v655_v25 = vsel %vm653_vm10, %v2426_v16, %v2431_v19  ;;  %v659_v26 = vsel %vm653_vm10, %v2430_v20, %v2425_v18  ;;  %v660_v27 = vsel %vm653_vm10, %v2431_v19, %v2426_v16 }
  0x95   : > { %v2444_v28 = vpop.permute.xlu1 %2443  ;;  %v2449_v29 = vpop.permute.xlu0 %2448  ;;  %v673_v30 = vmul.f32 %v2959_v3, %v654_v6  ;;  %v675_v31 = vmul.f32 %v2959_v3, %v655_v25  ;;  %v672_v33 = vmul.f32 %v2963_v4, %v659_v26  ;;  %v674_v35 = vmul.f32 %v2963_v4, %v660_v27 }
  0x96   : > { %v2446_v36 = vunpack.i.h.bf16 %v2444_v28  ;;  %v2445_v37 = vunpack.i.l.bf16 %v2444_v28  ;;  %v2451_v38 = vunpack.i.h.bf16 %v2449_v29  ;;  %v2450_v39 = vunpack.i.l.bf16 %v2449_v29 }
  0x97   : > { %v1044_v40 = vpack.c.bf16 %v675_v31, %v673_v30  ;;  %v1043_v57 = vpack.c.bf16 %v674_v35, %v672_v33  ;;  %v656_v59 = vsel %vm653_vm10, %v2435_v22, %v2440_v24  ;;  %v657_v60 = vsel %vm653_vm10, %v2436_v21, %v2441_v23 }
  0x98   : > { %v677_v62 = vmul.f32 %v2959_v3, %v656_v59  ;;  %v679_v63 = vmul.f32 %v2959_v3, %v657_v60  ;;  %v661_v2 = vsel %vm653_vm10, %v2440_v24, %v2435_v22  ;;  %v662_v9 = vsel %vm653_vm10, %v2441_v23, %v2436_v21 }
  0x99   : > { %1127 = vmatprep.subr.bf16.mxu0 %v1044_v40  ;;  %v2459_v12 = vpop.permute.xlu1 %2458  ;;  %v2454_v16 = vpop.permute.xlu0 %2453  ;;  %v676_v18 = vmul.f32 %v2963_v4, %v661_v2  ;;  %v678_v19 = vmul.f32 %v2963_v4, %v662_v9  ;;  %v658_v20 = vsel %vm653_vm10, %v2450_v39, %v2451_v38  ;;  %v703_v6 = vsel %vm702_vm11, %v2445_v37, %v2446_v36 }
  0x9a   : > { %1128 = vmatpush1.bf16.msra.mxu0 %v1043_v57  ;;  %v1046_v22 = vpack.c.bf16 %v679_v63, %v677_v62  ;;  %v2461_v24 = vunpack.i.h.bf16 %v2459_v12  ;;  %v2460_v25 = vunpack.i.l.bf16 %v2459_v12  ;;  %v2456_v21 = vunpack.i.h.bf16 %v2454_v16 }
  0x9b   : > { %v2455_v23 = vunpack.i.l.bf16 %v2454_v16  ;;  %v1045_v26 = vpack.c.bf16 %v678_v19, %v676_v18  ;;  %v681_v27 = vmul.f32 %v2959_v3, %v658_v20  ;;  %v722_v28 = vmul.f32 %v2968_v7, %v703_v6 }
  0x9c   : > { %1129 = vmatprep.subr.bf16.mxu0 %v1046_v22  ;;  %v663_v29 = vsel %vm653_vm10, %v2451_v38, %v2450_v39  ;;  %v708_v30 = vsel %vm702_vm11, %v2446_v36, %v2445_v37  ;;  %v705_v31 = vsel %vm702_vm11, %v2456_v21, %v2461_v24  ;;  %v710_v33 = vsel %vm702_vm11, %v2461_v24, %v2456_v21 }
  0x9d   : > { %v2474_v35 = vpop.permute.xlu1 %2473  ;;  %v2464_v40 = vpop.permute.xlu0 %2463  ;;  %v1048_v57 = vpack.c.bf16 %v722_v28, %v681_v27  ;;  %v680_v59 = vmul.f32 %v2963_v4, %v663_v29  ;;  %v721_v60 = vmul.f32 %v2972_v13, %v708_v30  ;;  %v704_v62 = vsel %vm702_vm11, %v2455_v23, %v2460_v25 }
  0x9e   : > { %1130 = vmatpush1.bf16.msra.mxu0 %v1045_v26  ;;  %v2476_v38 = vunpack.i.h.bf16 %v2474_v35  ;;  %v2475_v39 = vunpack.i.l.bf16 %v2474_v35  ;;  %v2466_v36 = vunpack.i.h.bf16 %v2464_v40  ;;  %v2465_v37 = vunpack.i.l.bf16 %v2464_v40 }
  0x9f   : > { %1131 = vmatprep.subr.bf16.mxu0 %v1048_v57  ;;  %v1047_v63 = vpack.c.bf16 %v721_v60, %v680_v59  ;;  %v724_v2 = vmul.f32 %v2968_v7, %v704_v62  ;;  %v726_v9 = vmul.f32 %v2968_v7, %v705_v31  ;;  %v709_v12 = vsel %vm702_vm11, %v2460_v25, %v2455_v23 }
  0xa0   : > { %v723_v16 = vmul.f32 %v2972_v13, %v709_v12  ;;  %v725_v18 = vmul.f32 %v2972_v13, %v710_v33  ;;  %v706_v19 = vsel %vm702_vm11, %v2465_v37, %v2475_v39  ;;  %v707_v20 = vsel %vm702_vm11, %v2466_v36, %v2476_v38 }
  0xa1   : > { %v2479_v6 = vpop.permute.xlu1 %2478  ;;  %v2469_v22 = vpop.permute.xlu0 %2468  ;;  %v1050_v24 = vpack.c.bf16 %v726_v9, %v724_v2  ;;  %v728_v21 = vmul.f32 %v2968_v7, %v706_v19  ;;  %v730_v26 = vmul.f32 %v2968_v7, %v707_v20  ;;  %v711_v25 = vsel %vm702_vm11, %v2475_v39, %v2465_v37 }
  0xa2   : > { %1132 = vmatpush1.bf16.msra.mxu0 %v1047_v63  ;;  %v2481_v23 = vunpack.i.h.bf16 %v2479_v6  ;;  %v2480_v27 = vunpack.i.l.bf16 %v2479_v6  ;;  %v2471_v28 = vunpack.i.h.bf16 %v2469_v22  ;;  %v2470_v29 = vunpack.i.l.bf16 %v2469_v22 }
  0xa3   : > { %1133 = vmatprep.subr.bf16.mxu0 %v1050_v24  ;;  %v1049_v30 = vpack.c.bf16 %v725_v18, %v723_v16  ;;  %v1052_v31 = vpack.c.bf16 %v730_v26, %v728_v21  ;;  %v712_v33 = vsel %vm702_vm11, %v2476_v38, %v2466_v36  ;;  %v727_v35 = vmul.f32 %v2972_v13, %v711_v25 }
  0xa4   : > { %v729_v40 = vmul.f32 %v2972_v13, %v712_v33  ;;  %v752_v57 = vsel %vm751_vm12, %v2470_v29, %v2480_v27  ;;  %v753_v59 = vsel %vm751_vm12, %v2471_v28, %v2481_v23  ;;  %v757_v60 = vsel %vm751_vm12, %v2480_v27, %v2470_v29 }
  0xa5   : > { %v2489_v62 = vpop.permute.xlu1 %2488  ;;  %v2484_v39 = vpop.permute.xlu0 %2483  ;;  %v771_v37 = vmul.f32 %v2975_v14, %v752_v57  ;;  %v773_v63 = vmul.f32 %v2975_v14, %v753_v59  ;;  %v758_v38 = vsel %vm751_vm12, %v2481_v23, %v2471_v28  ;;  %v770_v36 = vmul.f32 %v2978_v15, %v757_v60 }
  0xa6   : > { %1134 = vmatpush1.bf16.msra.mxu0 %v1049_v30  ;;  %v2491_v2 = vunpack.i.h.bf16 %v2489_v62  ;;  %v2490_v9 = vunpack.i.l.bf16 %v2489_v62  ;;  %v2486_v12 = vunpack.i.h.bf16 %v2484_v39  ;;  %v2485_v16 = vunpack.i.l.bf16 %v2484_v39 }
  0xa7   : > { %1135 = vmatprep.subr.bf16.mxu0 %v1052_v31  ;;  %v1051_v18 = vpack.c.bf16 %v729_v40, %v727_v35  ;;  %v1054_v19 = vpack.c.bf16 %v773_v63, %v771_v37  ;;  %v772_v20 = vmul.f32 %v2978_v15, %v758_v38  ;;  %v3058_v6 = vrot.slane %v2862_v41, %v813_v5 }
  0xa8   : > { %v754_v22 = vsel %vm751_vm12, %v2485_v16, %v2490_v9  ;;  %v755_v24 = vsel %vm751_vm12, %v2486_v12, %v2491_v2  ;;  %v759_v21 = vsel %vm751_vm12, %v2490_v9, %v2485_v16  ;;  %v760_v26 = vsel %vm751_vm12, %v2491_v2, %v2486_v12 }
  0xa9   : > { %v2499_v25 = vpop.permute.xlu1 %2498  ;;  %v2494_v23 = vpop.permute.xlu0 %2493  ;;  %v1053_v27 = vpack.c.bf16 %v772_v20, %v770_v36  ;;  %v775_v28 = vmul.f32 %v2975_v14, %v754_v22  ;;  %v777_v29 = vmul.f32 %v2975_v14, %v755_v24  ;;  %v774_v30 = vmul.f32 %v2978_v15, %v759_v21 }
  0xaa   : > { %1136 = vmatpush1.bf16.msra.mxu0 %v1051_v18  ;;  %v2501_v31 = vunpack.i.h.bf16 %v2499_v25  ;;  %v2500_v33 = vunpack.i.l.bf16 %v2499_v25  ;;  %v2496_v35 = vunpack.i.h.bf16 %v2494_v23  ;;  %v2495_v40 = vunpack.i.l.bf16 %v2494_v23 }
  0xab   : > { %1137 = vmatprep.subr.bf16.mxu0 %v1054_v19  ;;  %v1056_v57 = vpack.c.bf16 %v777_v29, %v775_v28  ;;  %v776_v59 = vmul.f32 %v2978_v15, %v760_v26  ;;  %v3075_v60 = vrot.slane %v2867_v42, %v813_v5 }
  0xac   : > { %v756_v62 = vsel %vm751_vm12, %v2495_v40, %v2496_v35  ;;  %v801_v39 = vsel %vm800_vm13, %v2500_v33, %v2501_v31  ;;  %v761_v37 = vsel %vm751_vm12, %v2496_v35, %v2495_v40  ;;  %v806_v63 = vsel %vm800_vm13, %v2501_v31, %v2500_v33 }
  0xad   : > { %v2509_v38 = vpop.permute.xlu1 %2508  ;;  %v2504_v36 = vpop.permute.xlu0 %2503  ;;  %v1055_v2 = vpack.c.bf16 %v776_v59, %v774_v30  ;;  %v779_v9 = vmul.f32 %v2975_v14, %v756_v62  ;;  %v820_v5 = vmul.f32 %v3058_v6, %v801_v39  ;;  %v778_v12 = vmul.f32 %v2978_v15, %v761_v37 }
  0xae   : > { %1138 = vmatpush1.bf16.msra.mxu0 %v1053_v27  ;;  %v2511_v16 = vunpack.i.h.bf16 %v2509_v38  ;;  %v2510_v18 = vunpack.i.l.bf16 %v2509_v38  ;;  %v2506_v19 = vunpack.i.h.bf16 %v2504_v36  ;;  %v2505_v20 = vunpack.i.l.bf16 %v2504_v36 }
  0xaf   : > { %1139 = vmatprep.subr.bf16.mxu0 %v1056_v57  ;;  %v1058_v22 = vpack.c.bf16 %v820_v5, %v779_v9  ;;  %v819_v24 = vmul.f32 %v3075_v60, %v806_v63 }
  0xb0   : > { %v802_v21 = vsel %vm800_vm13, %v2505_v20, %v2510_v18  ;;  %v803_v26 = vsel %vm800_vm13, %v2506_v19, %v2511_v16  ;;  %v807_v25 = vsel %vm800_vm13, %v2510_v18, %v2505_v20  ;;  %v808_v23 = vsel %vm800_vm13, %v2511_v16, %v2506_v19 }
  0xb1   : > { %v2519_v27 = vpop.permute.xlu1 %2518  ;;  %v2514_v28 = vpop.permute.xlu0 %2513  ;;  %v1057_v29 = vpack.c.bf16 %v819_v24, %v778_v12  ;;  %v822_v30 = vmul.f32 %v3058_v6, %v802_v21  ;;  %v824_v31 = vmul.f32 %v3058_v6, %v803_v26  ;;  %v821_v33 = vmul.f32 %v3075_v60, %v807_v25 }
  0xb2   : > { %1140 = vmatpush1.bf16.msra.mxu0 %v1055_v2  ;;  %v2521_v35 = vunpack.i.h.bf16 %v2519_v27  ;;  %v2520_v40 = vunpack.i.l.bf16 %v2519_v27  ;;  %v2516_v57 = vunpack.i.h.bf16 %v2514_v28  ;;  %v2515_v59 = vunpack.i.l.bf16 %v2514_v28 }
  0xb3   : > { %1141 = vmatprep.subr.bf16.mxu0 %v1058_v22  ;;  %v1060_v62 = vpack.c.bf16 %v824_v31, %v822_v30  ;;  %v823_v39 = vmul.f32 %v3075_v60, %v808_v23  ;;  %v880_v22 = vsub.s32 5, %v2760_v1 }
  0xb4   : > { %v804_v37 = vsel %vm800_vm13, %v2515_v59, %v2520_v40  ;;  %v805_v63 = vsel %vm800_vm13, %v2516_v57, %v2521_v35  ;;  %v809_v38 = vsel %vm800_vm13, %v2520_v40, %v2515_v59  ;;  %v810_v36 = vsel %vm800_vm13, %v2521_v35, %v2516_v57 }
  0xb5   : > { %v826_v2 = vmul.f32 %v3058_v6, %v804_v37  ;;  %v828_v9 = vmul.f32 %v3058_v6, %v805_v63  ;;  %v2524_v5 = vpop.permute.xlu0 %2523  ;;  %v2529_v12 = vpop.permute.xlu1 %2528  ;;  %v1059_v16 = vpack.c.bf16 %v823_v39, %v821_v33  ;;  %v825_v18 = vmul.f32 %v3075_v60, %v809_v38 }
  0xb6   : > { %1142 = vmatpush1.bf16.msra.mxu0 %v1057_v29  ;;  %v827_v19 = vmul.f32 %v3075_v60, %v810_v36  ;;  %v2526_v24 = vunpack.i.h.bf16 %v2524_v5  ;;  %v2525_v21 = vunpack.i.l.bf16 %v2524_v5  ;;  %v2531_v26 = vunpack.i.h.bf16 %v2529_v12 }
  0xb7   : > { %1143 = vmatprep.subr.bf16.mxu0 %v1060_v62  ;;  %v1062_v20 = vpack.c.bf16 %v828_v9, %v826_v2  ;;  %v2530_v28 = vunpack.i.l.bf16 %v2529_v12  ;;  %v3116_v31 = vrot.slane %v2862_v41, %v880_v22  ;;  %v3119_v33 = vrot.slane %v2867_v42, %v880_v22 }
  0xb8   : > { %v1061_v27 = vpack.c.bf16 %v827_v19, %v825_v18  ;;  %v868_v35 = vsel %vm867_vm14, %v2525_v21, %v2526_v24  ;;  %v873_v40 = vsel %vm867_vm14, %v2526_v24, %v2525_v21  ;;  %v846_v59 = vmul.f32 %v2828_v34, %v2872_v43 }
  0xb9   : > { %v2534_v25 = vpop.permute.xlu0 %2533  ;;  %v2539_v23 = vpop.permute.xlu1 %2538  ;;  %v887_v34 = vmul.f32 %v3116_v31, %v873_v40  ;;  %v845_v36 = vmul.f32 %v2821_v32, %v2875_v44  ;;  %v886_v2 = vmul.f32 %v3119_v33, %v868_v35  ;;  %v929_v9 = vsub.s32 6, %v2760_v1 }
  0xba   : > { %1144 = vmatpush1.bf16.msra.mxu0 %v1059_v16  ;;  %v2536_v29 = vunpack.i.h.bf16 %v2534_v25  ;;  %v2535_v30 = vunpack.i.l.bf16 %v2534_v25  ;;  %v2541_v5 = vunpack.i.h.bf16 %v2539_v23  ;;  %v2540_v12 = vunpack.i.l.bf16 %v2539_v23 }
  0xbb   : > { %1145 = vmatprep.subr.bf16.mxu0 %v1062_v20  ;;  %v1068_v25 = vpack.c.bf16 %v887_v34, %v846_v59 }
  0xbc   : > { %v870_v39 = vsel %vm867_vm14, %v2531_v26, %v2536_v29  ;;  %v875_v37 = vsel %vm867_vm14, %v2536_v29, %v2531_v26  ;;  %v869_v63 = vsel %vm867_vm14, %v2530_v28, %v2535_v30  ;;  %v874_v38 = vsel %vm867_vm14, %v2535_v30, %v2530_v28 }
  0xbd   : > { %v2544_v57 = vpop.permute.xlu0 %2543  ;;  %v2549_v62 = vpop.permute.xlu1 %2548  ;;  %v889_v20 = vmul.f32 %v3116_v31, %v874_v38  ;;  %v891_v22 = vmul.f32 %v3116_v31, %v875_v37  ;;  %v888_v45 = vmul.f32 %v3119_v33, %v869_v63  ;;  %v890_v46 = vmul.f32 %v3119_v33, %v870_v39 }
  0xbe   : > { %1146 = vmatpush1.bf16.msra.mxu0 %v1061_v27  ;;  %v2546_v16 = vunpack.i.h.bf16 %v2544_v57  ;;  %v2545_v18 = vunpack.i.l.bf16 %v2544_v57  ;;  %v2551_v32 = vunpack.i.h.bf16 %v2549_v62  ;;  %v2550_v24 = vunpack.i.l.bf16 %v2549_v62 }
  0xbf   : > { %1147 = vmatprep.subr.bf16.mxu0 %v1064_v51  ;;  %v3163_v28 = vrot.slane %v2867_v42, %v929_v9  ;;  %v3167_v29 = vrot.slane %v2862_v41, %v929_v9  ;;  %v1070_v40 = vpack.c.bf16 %v891_v22, %v889_v20  ;;  %v1069_v57 = vpack.c.bf16 %v890_v46, %v888_v45 }
  0xc0   : > { %v872_v23 = vsel %vm867_vm14, %v2541_v5, %v2546_v16  ;;  %v877_v27 = vsel %vm867_vm14, %v2546_v16, %v2541_v5  ;;  %v871_v47 = vsel %vm867_vm14, %v2540_v12, %v2545_v18  ;;  %v876_v48 = vsel %vm867_vm14, %v2545_v18, %v2540_v12 }
  0xc1   : > { %v2554_v19 = vpop.permute.xlu0 %2553  ;;  %v2559_v51 = vpop.permute.xlu1 %2558  ;;  %v893_v59 = vmul.f32 %v3116_v31, %v876_v48  ;;  %v895_v62 = vmul.f32 %v3116_v31, %v877_v27  ;;  %v892_v39 = vmul.f32 %v3119_v33, %v871_v47  ;;  %v894_v37 = vmul.f32 %v3119_v33, %v872_v23 }
  0xc2   : > { %1148 = vmatpush1.bf16.msra.mxu0 %v1063_v52  ;;  %v2556_v21 = vunpack.i.h.bf16 %v2554_v19  ;;  %v2555_v26 = vunpack.i.l.bf16 %v2554_v19  ;;  %v1067_v52 = vpack.c.bf16 %v886_v2, %v845_v36  ;;  %v2561_v63 = vunpack.i.h.bf16 %v2559_v51 }
  0xc3   : > { %1149 = vmatprep.subr.bf16.mxu0 %v1066_v54  ;;  %v978_v54 = vsub.s32 7, %v2760_v1  ;;  %v2560_v53 = vunpack.i.l.bf16 %v2559_v51  ;;  %v1072_v20 = vpack.c.bf16 %v895_v62, %v893_v59  ;;  %v1071_v51 = vpack.c.bf16 %v894_v37, %v892_v39 }
  0xc4   : > { %v923_v30 = vsel %vm916_vm15, %v2556_v21, %v2551_v32  ;;  %v922_v35 = vsel %vm916_vm15, %v2555_v26, %v2550_v24  ;;  %v918_v38 = vsel %vm916_vm15, %v2551_v32, %v2556_v21  ;;  %v917_v34 = vsel %vm916_vm15, %v2550_v24, %v2555_v26 }
  0xc5   : > { %v2564_v49 = vpop.permute.xlu0 %2563  ;;  %v2569_v50 = vpop.permute.xlu1 %2568  ;;  %v936_v2 = vmul.f32 %v3167_v29, %v922_v35  ;;  %v938_v9 = vmul.f32 %v3167_v29, %v923_v30  ;;  %v3188_v22 = vrot.slane %v2862_v41, %v978_v54  ;;  %v935_v32 = vmul.f32 %v3163_v28, %v917_v34 }
  0xc6   : > { %1150 = vmatpush1.bf16.msra.mxu0 %v1065_v56  ;;  %v2566_v55 = vunpack.i.h.bf16 %v2564_v49  ;;  %v2565_v56 = vunpack.i.l.bf16 %v2564_v49  ;;  %v2571_v12 = vunpack.i.h.bf16 %v2569_v50  ;;  %v2570_v16 = vunpack.i.l.bf16 %v2569_v50 }
  0xc7   : > { %1151 = vmatprep.subr.bf16.mxu0 %v1068_v25  ;;  %v1074_v26 = vpack.c.bf16 %v938_v9, %v936_v2  ;;  %v937_v25 = vmul.f32 %v3163_v28, %v918_v38 }
  0xc8   : > { %v925_v45 = vsel %vm916_vm15, %v2566_v55, %v2561_v63  ;;  %v924_v46 = vsel %vm916_vm15, %v2565_v56, %v2560_v53  ;;  %v920_v24 = vsel %vm916_vm15, %v2561_v63, %v2566_v55  ;;  %v919_v21 = vsel %vm916_vm15, %v2560_v53, %v2565_v56 }
  0xc9   : > { %v2574_v36 = vpop.permute.xlu0 %2573  ;;  %v2579_v5 = vpop.permute.xlu1 %2578  ;;  %v926_v27 = vsel %vm916_vm15, %v2571_v12, %v2570_v16  ;;  %v940_v30 = vmul.f32 %v3167_v29, %v924_v46  ;;  %v942_v35 = vmul.f32 %v3167_v29, %v925_v45  ;;  %v939_v59 = vmul.f32 %v3163_v28, %v919_v21 }
  0xca   : > { %1152 = vmatpush1.bf16.msra.mxu0 %v1067_v52  ;;  %v2576_v18 = vunpack.i.h.bf16 %v2574_v36  ;;  %v2575_v19 = vunpack.i.l.bf16 %v2574_v36  ;;  %v2581_v48 = vunpack.i.h.bf16 %v2579_v5  ;;  %v2580_v52 = vunpack.i.l.bf16 %v2579_v5 }
  0xcb   : > { %1153 = vmatprep.subr.bf16.mxu0 %v1070_v40  ;;  %v3207_v40 = vrot.slane %v2867_v42, %v978_v54  ;;  %v944_v39 = vmul.f32 %v3167_v29, %v926_v27  ;;  %v921_v53 = vsel %vm916_vm15, %v2570_v16, %v2571_v12  ;;  %v1073_v42 = vpack.c.bf16 %v937_v25, %v935_v32  ;;  %v2624_v16 = vld [vmem:[%s3822_s2] ss:$12 sps:$4 sm:$0xff]  }
  0xcc   : > { %v971_v47 = vsel %vm965_vm0, %v2576_v18, %v2575_v19  ;;  %v966_v55 = vsel %vm965_vm0, %v2575_v19, %v2576_v18  ;;  %v1076_v38 = vpack.c.bf16 %v942_v35, %v940_v30  ;;  %v943_v5 = vmul.f32 %v3163_v28, %v921_v53 }
  0xcd   : > { %v2584_v41 = vpop.permute.xlu0 %2583  ;;  %v2589_v23 = vpop.permute.xlu1 %2588  ;;  %v985_v37 = vmul.f32 %v3188_v22, %v971_v47  ;;  %v984_v12 = vmul.f32 %v3207_v40, %v966_v55 }
  0xce   : > { %1154 = vmatpush1.bf16.msra.mxu0 %v1069_v57  ;;  %v2586_v49 = vunpack.i.h.bf16 %v2584_v41  ;;  %v2585_v50 = vunpack.i.l.bf16 %v2584_v41  ;;  %v941_v57 = vmul.f32 %v3163_v28, %v920_v24  ;;  %v2591_v34 = vunpack.i.h.bf16 %v2589_v23 }
  0xcf   : > { %1155 = vmatprep.subr.bf16.mxu0 %v1072_v20  ;;  %v2590_v36 = vunpack.i.l.bf16 %v2589_v23  ;;  %v1078_v19 = vpack.c.bf16 %v985_v37, %v944_v39  ;;  %v3257_v37 = vld [vmem:[%s3821_s1 + $0x18] ss:$0 sm:$0xff] }
  0xd0   : > { %v973_v54 = vsel %vm965_vm0, %v2586_v49, %v2581_v48  ;;  %v972_v56 = vsel %vm965_vm0, %v2585_v50, %v2580_v52  ;;  %v1075_v18 = vpack.c.bf16 %v941_v57, %v939_v59  ;;  %v968_v45 = vsel %vm965_vm0, %v2581_v48, %v2586_v49 }
  0xd1   : > { %v2594_v62 = vpop.permute.xlu0 %2593  ;;  %v3213_v63 = vpop.permute.xlu1 %2598  ;;  %v967_v46 = vsel %vm965_vm0, %v2580_v52, %v2585_v50  ;;  %v989_v32 = vmul.f32 %v3188_v22, %v973_v54  ;;  %v988_v47 = vmul.f32 %v3207_v40, %v968_v45  ;;  %v1077_v52 = vpack.c.bf16 %v984_v12, %v943_v5 }
  0xd2   : > { %1156 = vmatpush1.bf16.msra.mxu0 %v1071_v51  ;;  %v2596_v2 = vunpack.i.h.bf16 %v2594_v62  ;;  %v2595_v9 = vunpack.i.l.bf16 %v2594_v62  ;;  %v987_v51 = vmul.f32 %v3188_v22, %v972_v56  ;;  %v2601_v24 = vunpack.i.h.bf16 %v3213_v63 }
  0xd3   : > { %1157 = vmatprep.subr.bf16.mxu0 %v1074_v26  ;;  %v2600_v21 = vunpack.i.l.bf16 %v3213_v63  ;;  %v986_v48 = vmul.f32 %v3207_v40, %v967_v46 }
  0xd4   : > { %v975_v23 = vsel %vm965_vm0, %v2596_v2, %v2591_v34  ;;  %v974_v27 = vsel %vm965_vm0, %v2595_v9, %v2590_v36  ;;  %v970_v50 = vsel %vm965_vm0, %v2591_v34, %v2596_v2  ;;  %v969_v30 = vsel %vm965_vm0, %v2590_v36, %v2595_v9  ;;  %v3266_v9 = vld [vmem:[%s3821_s1 + $0x10] ss:$0 sm:$0xff] }
  0xd5   : > { %v2604_v20 = vpop.permute.xlu0 %2603  ;;  %v2609_v41 = vpop.permute.xlu1 %2608  ;;  %v1080_v35 = vpack.c.bf16 %v989_v32, %v987_v51  ;;  %v991_v62 = vmul.f32 %v3188_v22, %v974_v27  ;;  %v993_v39 = vmul.f32 %v3188_v22, %v975_v23  ;;  %v1079_v54 = vpack.c.bf16 %v988_v47, %v986_v48 }
  0xd6   : > { %1158 = vmatpush1.bf16.msra.mxu0 %v1073_v42  ;;  %v2606_v26 = vunpack.i.h.bf16 %v2604_v20  ;;  %v2605_v25 = vunpack.i.l.bf16 %v2604_v20  ;;  %v2611_v63 = vunpack.i.h.bf16 %v2609_v41  ;;  %v2610_v53 = vunpack.i.l.bf16 %v2609_v41 }
  0xd7   : > { %1170 = vmatprep.subr.bf16.mxu0 %v1076_v38  ;;  %v992_v38 = vmul.f32 %v3207_v40, %v970_v50  ;;  %v990_v34 = vmul.f32 %v3207_v40, %v969_v30 }
  0xd8   : > { %v1021_v57 = vsel %vm1014_vm1, %v2606_v26, %v2601_v24  ;;  %v1020_v59 = vsel %vm1014_vm1, %v2605_v25, %v2600_v21  ;;  %v1016_v5 = vsel %vm1014_vm1, %v2601_v24, %v2606_v26  ;;  %v1015_v12 = vsel %vm1014_vm1, %v2600_v21, %v2605_v25 }
  0xd9   : > { %1160 = vmatmul.mubr.bf16.vlgmr.msra.gmra.mrb[0].mxu0 %v2624_v16  ;;  %v2614_v49 = vpop.permute.xlu0 %2613  ;;  %v2619_v56 = vpop.permute.xlu1 %2618  ;;  %v1034_v36 = vmul.f32 %v3257_v37, %v1020_v59  ;;  %v1036_v2 = vmul.f32 %v3257_v37, %v1021_v57  ;;  %v1082_v16 = vpack.c.bf16 %v993_v39, %v991_v62  ;;  %v1035_v46 = vmul.f32 %v3266_v9, %v1016_v5  ;;  %v2627_v39 = vld [vmem:[%s3822_s2 + $0x8] ss:$12 sps:$4 sm:$0xff]  }
  0xda   : > { %1171 = vmatpush1.bf16.msra.mxu0 %v1075_v18  ;;  %1202 = vmatprep.mubr.bf16.mxu0 %v2677_v58  ;;  %v2616_v55 = vunpack.i.h.bf16 %v2614_v49  ;;  %v2615_v42 = vunpack.i.l.bf16 %v2614_v49  ;;  %v2621_v20 = vunpack.i.h.bf16 %v2619_v56  ;;  %v2620_v45 = vunpack.i.l.bf16 %v2619_v56 }
  0xdb   : > { %1172 = vmatprep.subr.bf16.mxu0 %v1078_v19  ;;  %v1033_v51 = vmul.f32 %v3266_v9, %v1015_v12  ;;  %v1081_v32 = vpack.c.bf16 %v992_v38, %v990_v34  ;;  %v1084_v24 = vpack.c.bf16 %v1036_v2, %v1034_v36 }
  0xdc   : > { %v1023_v18 = vsel %vm1014_vm1, %v2616_v55, %v2611_v63  ;;  %v1022_v19 = vsel %vm1014_vm1, %v2615_v42, %v2610_v53  ;;  %v1018_v21 = vsel %vm1014_vm1, %v2611_v63, %v2616_v55  ;;  %v1017_v26 = vsel %vm1014_vm1, %v2610_v53, %v2615_v42 }
  0xdd   : > { %v1038_v25 = vmul.f32 %v3257_v37, %v1022_v19  ;;  %v1040_v41 = vmul.f32 %v3257_v37, %v1023_v18  ;;  %v1019_v23 = vsel %vm1014_vm1, %v2620_v45, %v2621_v20  ;;  %v1024_v27 = vsel %vm1014_vm1, %v2621_v20, %v2620_v45 }
  0xde   : > { %1173 = vmatpush1.bf16.msra.mxu0 %v1077_v52  ;;  %v1039_v47 = vmul.f32 %v3266_v9, %v1018_v21  ;;  %v1037_v48 = vmul.f32 %v3266_v9, %v1017_v26  ;;  %v1083_v52 = vpack.c.bf16 %v1035_v46, %v1033_v51  ;;  %v1042_v49 = vmul.f32 %v3257_v37, %v1024_v27  ;;  %v1369_v21 = vld [vmem:[%s3825_s5] sm:$0xff]  ;;  %v1370_v26 = vld [vmem:[%s3825_s5 + $0x8] sm:$0xff] }
  0xdf   : > { %1174 = vmatprep.subr.bf16.mxu0 %v1080_v35  ;;  %v1086_v50 = vpack.c.bf16 %v1040_v41, %v1038_v25  ;;  %v1041_v30 = vmul.f32 %v3266_v9, %v1019_v23 }
  0xe0   : > { %v1085_v35 = vpack.c.bf16 %v1039_v47, %v1037_v48  ;;  %v1088_v57 = vpack.c.bf16 %v1042_v49, %v1042_v49 }
  0xe1   : > { %v1087_v59 = vpack.c.bf16 %v1041_v30, %v1041_v30 }
  0xe2   : > { %1175 = vmatpush1.bf16.msra.mxu0 %v1079_v54 }
  0xe3   : > { %1176 = vmatprep.subr.bf16.mxu0 %v1082_v16  ;;  %v1122_v62 = vsel %vm1120_vm2, %v1087_v59, 0 }
  0xe6   : > { %1177 = vmatpush1.bf16.msra.mxu0 %v1081_v32 }
  0xe7   : > { %1178 = vmatprep.subr.bf16.mxu0 %v1084_v24  ;;  %v2630_v24 = vld [vmem:[%s3824_s4 + $0x4] ss:$8 sps:$4 sm:$0xff]  }
  0xe8   : > { %2354 = vmatprep.mubr.msk.bf16.mxu1 %vm1390_vm4, %v2630_v24 }
  0xea   : > { %1179 = vmatpush1.bf16.msra.mxu0 %v1083_v52  ;;  %v1094_v63 = vpop.permute.xlu0 %1093  ;;  %v1099_v55 = vpop.permute.xlu1 %1098 }
  0xeb   : > { %1180 = vmatprep.subr.bf16.mxu0 %v1086_v50 }
  0xee   : > { %1181 = vmatpush1.bf16.msra.mxu0 %v1085_v35 }
  0xef   : > { %2350 = vmatprep.subr.msk.bf16.mxu0 %vm1120_vm2, %v1088_v57 }
  0xf2   : > { %1183 = vmatpush1.bf16.msra.mxu0 %v1122_v62 }
  0xf5   : > { %2351 = vmatmul.mubr.msk.bf16.vlgmr.msra.gmra.mrb[0].mxu0 %vm1116_vm3, %v2627_v39 }
  0xf6   : > { %1744 = vmatprep.mubr.bf16.mxu0 %v2677_v58 }
 0x1c8   : > { %v1204_v53 = vpop.f32.mrb[0].mxu0 }
 0x1c9   : > { %v2387_v42 = vadd.f32 %v1204_v53, %v1094_v63  ;;  %v1206_v54 = vpop.f32.mrb[1].mxu0 }
 0x1ca   : > { %v2388_v56 = vadd.f32 %v1206_v54, %v1094_v63  ;;  %v1208_v38 = vpop.f32.mrb[2].mxu0 }
 0x1cb   : > { %v1213_v34 = vmax.f32 %v2387_v42, 0.0  ;;  %v2389_v36 = vadd.f32 %v1208_v38, %v1099_v55  ;;  %v1210_v2 = vpop.f32.mrb[3].mxu0 }
 0x1cc   : > { %v1214_v5 = vmax.f32 %v2388_v56, 0.0  ;;  %v2390_v12 = vadd.f32 %v1210_v2, %v1099_v55 }
 0x1cd   : > { %v1215_v16 = vmax.f32 %v2389_v36, 0.0  ;;  %1219 = vrot.lane.b32.xlu1 %v1213_v34, %s2669_s14  ;;  %v3299_v19 = vmul.f32 %v1213_v34, %v2875_v44 }
 0x1ce   : > { %v1216_v18 = vmax.f32 %v2390_v12, 0.0  ;;  %v3305_v45 = vmul.f32 %v1214_v5, %v2872_v43 }
 0x1cf   : > { %1221 = vrot.lane.b32.xlu0 %v1215_v16, %s2669_s14  ;;  %v3302_v20 = vmul.f32 %v1215_v16, %v2875_v44 }
 0x1d0   : > { %v3308_v46 = vmul.f32 %v1216_v18, %v2872_v43 }
 0x1d1   : > { %1235 = vrot.lane.b32.xlu1 %v1213_v34, %s2670_s15  ;;  %v1359_v51 = vpack.c.bf16 %v3302_v20, %v3299_v19 }
 0x1d2   : > { %v1360_v32 = vpack.c.bf16 %v3308_v46, %v3305_v45 }
 0x1d3   : > { %1237 = vrot.lane.b32.xlu0 %v1215_v16, %s2670_s15 }
 0x1d5   : > { %1251 = vrot.lane.b32.xlu1 %v1213_v34, %s2671_s16 }
 0x1d7   : > { %1253 = vrot.lane.b32.xlu0 %v1215_v16, %s2671_s16 }
 0x1d9   : > { %1267 = vrot.lane.b32.xlu1 %v1213_v34, %s2672_s17 }
 0x1db   : > { %1269 = vrot.lane.b32.xlu0 %v1215_v16, %s2672_s17 }
 0x1dd   : > { %1287 = vrot.lane.b32.xlu1 %v1213_v34, %s2673_s22 }
 0x1df   : > { %1289 = vrot.lane.b32.xlu0 %v1215_v16, %s2673_s22 }
 0x1e1   : > { %1303 = vrot.lane.b32.xlu1 %v1213_v34, %s2674_s23 }
 0x1e3   : > { %1305 = vrot.lane.b32.xlu0 %v1215_v16, %s2674_s23 }
 0x1e5   : > { %1319 = vrot.lane.b32.xlu1 %v1213_v34, %s2675_s28 }
 0x1e7   : > { %1321 = vrot.lane.b32.xlu0 %v1215_v16, %s2675_s28 }
 0x1e9   : > { %1223 = vrot.lane.b32.xlu1 %v1214_v5, %s2669_s14 }
 0x1eb   : > { %1225 = vrot.lane.b32.xlu0 %v1216_v18, %s2669_s14 }
 0x1ed   : > { %1239 = vrot.lane.b32.xlu1 %v1214_v5, %s2670_s15 }
 0x1ef   : > { %1241 = vrot.lane.b32.xlu0 %v1216_v18, %s2670_s15 }
 0x1f1   : > { %1255 = vrot.lane.b32.xlu1 %v1214_v5, %s2671_s16 }
 0x1f3   : > { %1257 = vrot.lane.b32.xlu0 %v1216_v18, %s2671_s16 }
 0x1f5   : > { %1271 = vrot.lane.b32.xlu1 %v1214_v5, %s2672_s17 }
 0x1f7   : > { %1273 = vrot.lane.b32.xlu0 %v1216_v18, %s2672_s17 }
 0x1f9   : > { %1335 = vrot.lane.b32.xlu1 %v1213_v34, %s2676_s29 }
 0x1fb   : > { %1337 = vrot.lane.b32.xlu0 %v1215_v16, %s2676_s29 }
 0x1fd   : > { %1291 = vrot.lane.b32.xlu1 %v1214_v5, %s2673_s22 }
 0x1ff   : > { %1293 = vrot.lane.b32.xlu0 %v1216_v18, %s2673_s22 }
 0x201   : > { %1307 = vrot.lane.b32.xlu1 %v1214_v5, %s2674_s23 }
 0x203   : > { %1309 = vrot.lane.b32.xlu0 %v1216_v18, %s2674_s23 }
 0x205   : > { %1323 = vrot.lane.b32.xlu1 %v1214_v5, %s2675_s28 }
 0x207   : > { %1325 = vrot.lane.b32.xlu0 %v1216_v18, %s2675_s28 }
 0x209   : > { %1339 = vrot.lane.b32.xlu1 %v1214_v5, %s2676_s29 }
 0x20b   : > { %1341 = vrot.lane.b32.xlu0 %v1216_v18, %s2676_s29 }
 0x20d   : > { %1373 = vperm.xlu1 %2623, %v1369_v21  }
 0x20f   : > { %1378 = vperm.xlu0 %2622, %v1370_v26  }
 0x23f   : > { %v1220_v25 = vpop.permute.xlu1 %1219 }
 0x241   : > { %v1222_v41 = vpop.permute.xlu0 %1221 }
 0x243   : > { %v1236_v23 = vpop.permute.xlu1 %1235 }
 0x245   : > { %v1238_v27 = vpop.permute.xlu0 %1237 }
 0x247   : > { %v1252_v47 = vpop.permute.xlu1 %1251 }
 0x249   : > { %v1254_v48 = vpop.permute.xlu0 %1253 }
 0x24b   : > { %v1268_v52 = vpop.permute.xlu1 %1267 }
 0x24d   : > { %v1270_v49 = vpop.permute.xlu0 %1269 }
 0x24f   : > { %v3354_v50 = vpop.permute.xlu1 %1287 }
 0x251   : > { %v3356_v30 = vpop.permute.xlu0 %1289 }
 0x253   : > { %v3358_v35 = vpop.permute.xlu1 %1303 }
 0x255   : > { %v3360_v57 = vpop.permute.xlu0 %1305 }
 0x257   : > { %v3362_v59 = vpop.permute.xlu1 %1319 }
 0x259   : > { %v3364_v62 = vpop.permute.xlu0 %1321 }
 0x25b   : > { %v1224_v39 = vpop.permute.xlu1 %1223 }
 0x25c   : > { %v1227_v63 = vsel %vm653_vm10, %v1220_v25, %v1224_v39  ;;  %v1229_v53 = vsel %vm653_vm10, %v1224_v39, %v1220_v25 }
 0x25d   : > { %v1226_v55 = vpop.permute.xlu0 %1225  ;;  %v1231_v56 = vmul.f32 %v1229_v53, %v2963_v4  ;;  %v1232_v36 = vmul.f32 %v1227_v63, %v2959_v3 }
 0x25e   : > { %v1228_v42 = vsel %vm653_vm10, %v1222_v41, %v1226_v55  ;;  %v1230_v54 = vsel %vm653_vm10, %v1226_v55, %v1222_v41 }
 0x25f   : > { %v1233_v38 = vmul.f32 %v1230_v54, %v2963_v4  ;;  %v1240_v34 = vpop.permute.xlu1 %1239  ;;  %v1234_v2 = vmul.f32 %v1228_v42, %v2959_v3 }
 0x260   : > { %v1243_v5 = vsel %vm702_vm11, %v1236_v23, %v1240_v34  ;;  %v1245_v12 = vsel %vm702_vm11, %v1240_v34, %v1236_v23 }
 0x261   : > { %v1242_v16 = vpop.permute.xlu0 %1241  ;;  %v1352_v18 = vpack.c.bf16 %v1234_v2, %v1232_v36  ;;  %v1351_v24 = vpack.c.bf16 %v1233_v38, %v1231_v56  ;;  %v1247_v25 = vmul.f32 %v1245_v12, %v2972_v13  ;;  %v1248_v41 = vmul.f32 %v1243_v5, %v2968_v7 }
 0x262   : > { %v1244_v21 = vsel %vm702_vm11, %v1238_v27, %v1242_v16  ;;  %v1246_v26 = vsel %vm702_vm11, %v1242_v16, %v1238_v27 }
 0x263   : > { %v1249_v39 = vmul.f32 %v1246_v26, %v2972_v13  ;;  %v1250_v63 = vmul.f32 %v1244_v21, %v2968_v7  ;;  %1394 = vmatprep.subr.bf16.mxu1 %v1352_v18  ;;  %v1256_v53 = vpop.permute.xlu1 %1255 }
 0x264   : > { %v1259_v23 = vsel %vm751_vm12, %v1252_v47, %v1256_v53  ;;  %v1261_v55 = vsel %vm751_vm12, %v1256_v53, %v1252_v47  ;;  %1395 = vmatpush1.bf16.msra.mxu1 %v1351_v24 }
 0x265   : > { %v1258_v42 = vpop.permute.xlu0 %1257  ;;  %v1354_v54 = vpack.c.bf16 %v1250_v63, %v1248_v41  ;;  %v1353_v27 = vpack.c.bf16 %v1249_v39, %v1247_v25  ;;  %v1263_v34 = vmul.f32 %v1261_v55, %v2978_v15  ;;  %v1264_v36 = vmul.f32 %v1259_v23, %v2975_v14 }
 0x266   : > { %v1260_v56 = vsel %vm751_vm12, %v1254_v48, %v1258_v42  ;;  %v1262_v38 = vsel %vm751_vm12, %v1258_v42, %v1254_v48 }
 0x267   : > { %v1265_v2 = vmul.f32 %v1262_v38, %v2978_v15  ;;  %v1266_v5 = vmul.f32 %v1260_v56, %v2975_v14  ;;  %1396 = vmatprep.subr.bf16.mxu1 %v1354_v54  ;;  %v1272_v47 = vpop.permute.xlu1 %1271 }
 0x268   : > { %v1275_v12 = vsel %vm800_vm13, %v1268_v52, %v1272_v47  ;;  %v1277_v16 = vsel %vm800_vm13, %v1272_v47, %v1268_v52  ;;  %1397 = vmatpush1.bf16.msra.mxu1 %v1353_v27 }
 0x269   : > { %v1274_v18 = vpop.permute.xlu0 %1273  ;;  %v1356_v24 = vpack.c.bf16 %v1266_v5, %v1264_v36  ;;  %v1355_v48 = vpack.c.bf16 %v1265_v2, %v1263_v34  ;;  %v1279_v25 = vmul.f32 %v1277_v16, %v3075_v60  ;;  %v1280_v41 = vmul.f32 %v1275_v12, %v3058_v6 }
 0x26a   : > { %v1276_v21 = vsel %vm800_vm13, %v1270_v49, %v1274_v18  ;;  %v1278_v26 = vsel %vm800_vm13, %v1274_v18, %v1270_v49 }
 0x26b   : > { %v1281_v39 = vmul.f32 %v1278_v26, %v3075_v60  ;;  %v1282_v63 = vmul.f32 %v1276_v21, %v3058_v6  ;;  %1398 = vmatprep.subr.bf16.mxu1 %v1356_v24  ;;  %v1336_v52 = vpop.permute.xlu1 %1335 }
 0x26c   : > { %1399 = vmatpush1.bf16.msra.mxu1 %v1355_v48 }
 0x26d   : > { %v1338_v53 = vpop.permute.xlu0 %1337  ;;  %v1358_v23 = vpack.c.bf16 %v1282_v63, %v1280_v41  ;;  %v1357_v55 = vpack.c.bf16 %v1281_v39, %v1279_v25 }
 0x26f   : > { %1400 = vmatprep.subr.bf16.mxu1 %v1358_v23  ;;  %v1292_v42 = vpop.permute.xlu1 %1291 }
 0x270   : > { %v1295_v49 = vsel %vm867_vm14, %v3354_v50, %v1292_v42  ;;  %v1297_v54 = vsel %vm867_vm14, %v1292_v42, %v3354_v50  ;;  %1401 = vmatpush1.bf16.msra.mxu1 %v1357_v55 }
 0x271   : > { %v1294_v27 = vpop.permute.xlu0 %1293  ;;  %1402 = vmatprep.subr.bf16.mxu1 %v1360_v32  ;;  %v1299_v34 = vmul.f32 %v1295_v49, %v3119_v33  ;;  %v1300_v36 = vmul.f32 %v1297_v54, %v3116_v31 }
 0x272   : > { %v1296_v56 = vsel %vm867_vm14, %v3356_v30, %v1294_v27  ;;  %v1298_v38 = vsel %vm867_vm14, %v1294_v27, %v3356_v30 }
 0x273   : > { %v1301_v50 = vmul.f32 %v1296_v56, %v3119_v33  ;;  %v1302_v2 = vmul.f32 %v1298_v38, %v3116_v31  ;;  %v1308_v5 = vpop.permute.xlu1 %1307 }
 0x274   : > { %v1311_v45 = vsel %vm916_vm15, %v3358_v35, %v1308_v5  ;;  %v1313_v46 = vsel %vm916_vm15, %v1308_v5, %v3358_v35  ;;  %1403 = vmatpush1.bf16.msra.mxu1 %v1359_v51 }
 0x275   : > { %v1310_v32 = vpop.permute.xlu0 %1309  ;;  %v1362_v30 = vpack.c.bf16 %v1302_v2, %v1300_v36  ;;  %v1361_v47 = vpack.c.bf16 %v1301_v50, %v1299_v34  ;;  %v1315_v18 = vmul.f32 %v1311_v45, %v3163_v28  ;;  %v1316_v24 = vmul.f32 %v1313_v46, %v3167_v29  ;;  %v2628_v45 = vld [vmem:[%s3824_s4] ss:$8 sps:$4 sm:$0xff]  }
 0x276   : > { %v1312_v12 = vsel %vm916_vm15, %v3360_v57, %v1310_v32  ;;  %v1314_v16 = vsel %vm916_vm15, %v1310_v32, %v3360_v57 }
 0x277   : > { %v1317_v35 = vmul.f32 %v1312_v12, %v3163_v28  ;;  %v1318_v19 = vmul.f32 %v1314_v16, %v3167_v29  ;;  %v1324_v20 = vpop.permute.xlu1 %1323  ;;  %1404 = vmatprep.subr.bf16.mxu1 %v1362_v30 }
 0x278   : > { %v1327_v51 = vsel %vm965_vm0, %v3362_v59, %v1324_v20  ;;  %v1329_v48 = vsel %vm965_vm0, %v1324_v20, %v3362_v59  ;;  %1405 = vmatpush1.bf16.msra.mxu1 %v1361_v47 }
 0x279   : > { %v1326_v57 = vpop.permute.xlu0 %1325  ;;  %v1364_v21 = vpack.c.bf16 %v1318_v19, %v1316_v24  ;;  %v1363_v26 = vpack.c.bf16 %v1317_v35, %v1315_v18  ;;  %v1331_v39 = vmul.f32 %v1327_v51, %v3207_v40  ;;  %v1332_v63 = vmul.f32 %v1329_v48, %v3188_v22 }
 0x27a   : > { %v1328_v25 = vsel %vm965_vm0, %v3364_v62, %v1326_v57  ;;  %v1330_v41 = vsel %vm965_vm0, %v1326_v57, %v3364_v62 }
 0x27b   : > { %v1333_v23 = vmul.f32 %v1328_v25, %v3207_v40  ;;  %v1334_v59 = vmul.f32 %v1330_v41, %v3188_v22  ;;  %v1340_v55 = vpop.permute.xlu1 %1339  ;;  %1406 = vmatprep.subr.bf16.mxu1 %v1364_v21 }
 0x27c   : > { %v1343_v42 = vsel %vm1014_vm1, %v1336_v52, %v1340_v55  ;;  %v1345_v49 = vsel %vm1014_vm1, %v1340_v55, %v1336_v52  ;;  %1407 = vmatpush1.bf16.msra.mxu1 %v1363_v26  ;;  %v1674_v55 = vld [vmem:[%s3827_s7 + $0x10] sm:$0xff] }
 0x27d   : > { %v1342_v54 = vpop.permute.xlu0 %1341  ;;  %v1366_v27 = vpack.c.bf16 %v1334_v59, %v1332_v63  ;;  %v1365_v62 = vpack.c.bf16 %v1333_v23, %v1331_v39  ;;  %v1347_v34 = vmul.f32 %v3266_v9, %v1343_v42  ;;  %v1348_v36 = vmul.f32 %v3257_v37, %v1345_v49  ;;  %v2358_v63 = vld [vmem:[%s3825_s5 + $0x18] sm:$0xff]  ;;  %v1672_v23 = vld [vmem:[%s3827_s7] sm:$0xff]  ;;  %v1673_v59 = vld [vmem:[%s3827_s7 + $0x8] sm:$0xff] }
 0x27e   : > { %v1344_v56 = vsel %vm1014_vm1, %v1338_v53, %v1342_v54  ;;  %v1346_v38 = vsel %vm1014_vm1, %v1342_v54, %v1338_v53  ;;  %v1675_v42 = vld [vmem:[%s3827_s7 + $0x18] sm:$0xff] }
 0x27f   : > { %v1349_v50 = vmul.f32 %v3266_v9, %v1344_v56  ;;  %v1350_v2 = vmul.f32 %v3257_v37, %v1346_v38  ;;  %1408 = vmatprep.subr.bf16.mxu1 %v1366_v27 }
 0x280   : > { %1409 = vmatpush1.bf16.msra.mxu1 %v1365_v62 }
 0x281   : > { %v1368_v52 = vpack.c.bf16 %v1350_v2, %v1348_v36  ;;  %v1367_v5 = vpack.c.bf16 %v1349_v50, %v1347_v34 }
 0x283   : > { %1410 = vmatprep.subr.bf16.mxu1 %v1368_v52 }
 0x284   : > { %1411 = vmatpush1.bf16.msra.mxu1 %v1367_v5 }
 0x287   : > { %1427 = vmatmul.mubr.bf16.vlgmr.msra.gmra.mrb[0].mxu1 %v2628_v45 }
 0x28c   : > { %v1374_v53 = vpop.permute.xlu1 %1373 }
 0x28e   : > { %v1379_v47 = vpop.permute.xlu0 %1378 }
 0x35a   : > { %v1428_v46 = vpop.f32.mrb[0].mxu1 }
 0x35b   : > { %v1429_v32 = vadd.f32 %v1428_v46, %v1374_v53  ;;  %v1430_v30 = vpop.f32.mrb[1].mxu1 }
 0x35c   : > { %v1431_v12 = vadd.f32 %v1430_v30, %v1374_v53  ;;  %v1432_v16 = vpop.f32.mrb[2].mxu1 }
 0x35d   : > { %v1437_v18 = vmax.f32 %v1429_v32, 0.0  ;;  %v1433_v24 = vadd.f32 %v1432_v16, %v1379_v47  ;;  %v1434_v35 = vpop.f32.mrb[3].mxu1 }
 0x35e   : > { %v1438_v19 = vmax.f32 %v1431_v12, 0.0  ;;  %v1435_v20 = vadd.f32 %v1434_v35, %v1379_v47 }
 0x35f   : > { %v1439_v51 = vmax.f32 %v1433_v24, 0.0  ;;  %1444 = vrot.lane.b32.xlu1 %v1437_v18, %s2669_s14  ;;  %v3486_v57 = vmul.f32 %v1437_v18, %v2875_v44 }
 0x360   : > { %v1440_v48 = vmax.f32 %v1435_v20, 0.0  ;;  %v3492_v26 = vmul.f32 %v1438_v19, %v2872_v43 }
 0x361   : > { %1446 = vrot.lane.b32.xlu0 %v1439_v51, %s2669_s14  ;;  %v3489_v21 = vmul.f32 %v1439_v51, %v2875_v44  ;;  %v2357_v44 = vld [vmem:[%s3825_s5 + $0x10] sm:$0xff] }
 0x362   : > { %v3495_v25 = vmul.f32 %v1440_v48, %v2872_v43  ;;  %v2631_v43 = vld [vmem:[%s3824_s4 + $0x14] ss:$8 sps:$4 sm:$0xff]  }
 0x363   : > { %1460 = vrot.lane.b32.xlu1 %v1437_v18, %s2670_s15  ;;  %v1584_v41 = vpack.c.bf16 %v3489_v21, %v3486_v57  ;;  %2361 = vmatprep.mubr.msk.bf16.mxu1 %vm1390_vm4, %v2631_v43 }
 0x364   : > { %v1585_v39 = vpack.c.bf16 %v3495_v25, %v3492_v26 }
 0x365   : > { %1462 = vrot.lane.b32.xlu0 %v1439_v51, %s2670_s15 }
 0x367   : > { %1476 = vrot.lane.b32.xlu1 %v1437_v18, %s2671_s16 }
 0x369   : > { %1478 = vrot.lane.b32.xlu0 %v1439_v51, %s2671_s16 }
 0x36b   : > { %1492 = vrot.lane.b32.xlu1 %v1437_v18, %s2672_s17 }
 0x36d   : > { %1494 = vrot.lane.b32.xlu0 %v1439_v51, %s2672_s17 }
 0x36f   : > { %1512 = vrot.lane.b32.xlu1 %v1437_v18, %s2673_s22 }
 0x371   : > { %1514 = vrot.lane.b32.xlu0 %v1439_v51, %s2673_s22 }
 0x373   : > { %1528 = vrot.lane.b32.xlu1 %v1437_v18, %s2674_s23 }
 0x375   : > { %1530 = vrot.lane.b32.xlu0 %v1439_v51, %s2674_s23 }
 0x377   : > { %1544 = vrot.lane.b32.xlu1 %v1437_v18, %s2675_s28 }
 0x379   : > { %1546 = vrot.lane.b32.xlu0 %v1439_v51, %s2675_s28 }
 0x37b   : > { %1448 = vrot.lane.b32.xlu1 %v1438_v19, %s2669_s14 }
 0x37d   : > { %1450 = vrot.lane.b32.xlu0 %v1440_v48, %s2669_s14  ;;  %s495_s14 = scalar_lea.vmem %s3829_s9, %s2373_s19 }
 0x37e   : > { %v2067_v49 = vld [vmem:[%s495_s14] sm:$0xff]  ;;  %v2068_v54 = vld [vmem:[%s495_s14 + $0x8] sm:$0xff]  ;;  %v2069_v27 = vld [vmem:[%s495_s14 + $0x10] sm:$0xff] }
 0x37f   : > { %1464 = vrot.lane.b32.xlu1 %v1438_v19, %s2670_s15  ;;  %v2070_v62 = vld [vmem:[%s495_s14 + $0x18] sm:$0xff] }
 0x381   : > { %1466 = vrot.lane.b32.xlu0 %v1440_v48, %s2670_s15 }
 0x383   : > { %1480 = vrot.lane.b32.xlu1 %v1438_v19, %s2671_s16 }
 0x385   : > { %1482 = vrot.lane.b32.xlu0 %v1440_v48, %s2671_s16  ;;  %s3780_s16 = scalar_lea.vmem %s3830_s10, %s2375_s24 }
 0x387   : > { %1496 = vrot.lane.b32.xlu1 %v1438_v19, %s2672_s17 }
 0x389   : > { %1498 = vrot.lane.b32.xlu0 %v1440_v48, %s2672_s17 }
 0x38b   : > { %1560 = vrot.lane.b32.xlu1 %v1437_v18, %s2676_s29 }
 0x38d   : > { %1562 = vrot.lane.b32.xlu0 %v1439_v51, %s2676_s29 }
 0x38f   : > { %1516 = vrot.lane.b32.xlu1 %v1438_v19, %s2673_s22 }
 0x391   : > { %1518 = vrot.lane.b32.xlu0 %v1440_v48, %s2673_s22 }
 0x393   : > { %1532 = vrot.lane.b32.xlu1 %v1438_v19, %s2674_s23 }
 0x395   : > { %1534 = vrot.lane.b32.xlu0 %v1440_v48, %s2674_s23  ;;  %s490_s23 = scalar_lea.vmem %s3828_s8, %s2373_s19 }
 0x397   : > { %1548 = vrot.lane.b32.xlu1 %v1438_v19, %s2675_s28 }
 0x399   : > { %1550 = vrot.lane.b32.xlu0 %v1440_v48, %s2675_s28  ;;  %s2332_s28 = sshll.u32 %s3837_s26, 1 }
 0x39a   : > { %s513_s18 = scalar_lea.vmem %s3833_s13, %s2332_s28 }
 0x39b   : > { %1564 = vrot.lane.b32.xlu1 %v1438_v19, %s2676_s29 }
 0x39d   : > { %1566 = vrot.lane.b32.xlu0 %v1440_v48, %s2676_s29  ;;  %s509_s29 = scalar_lea.vmem %s3832_s12, %s2332_s28 }
 0x39f   : > { %1599 = vperm.xlu1 %2623, %v2357_v44  }
 0x3a1   : > { %1604 = vperm.xlu0 %2622, %v2358_v63  }
 0x3a3   : > { %1678 = vperm.xlu1 %2623, %v1672_v23  }
 0x3a5   : > { %1683 = vperm.xlu0 %2622, %v1673_v59  }
 0x3a7   : > { %1688 = vperm.xlu1 %2623, %v1674_v55  }
 0x3a9   : > { %1693 = vperm.xlu0 %2622, %v1675_v42  }
 0x3ab   : > { %2081 = vperm.xlu1 %2623, %v2067_v49  }
 0x3ad   : > { %2086 = vperm.xlu0 %2622, %v2068_v54  }
 0x3af   : > { %2091 = vperm.xlu1 %2623, %v2069_v27  }
 0x3b1   : > { %2096 = vperm.xlu0 %2622, %v2070_v62  }
 0x3d1   : > { %v1445_v56 = vpop.permute.xlu1 %1444 }
 0x3d3   : > { %v1447_v38 = vpop.permute.xlu0 %1446 }
 0x3d5   : > { %v1461_v34 = vpop.permute.xlu1 %1460 }
 0x3d7   : > { %v1463_v36 = vpop.permute.xlu0 %1462 }
 0x3d9   : > { %v1477_v50 = vpop.permute.xlu1 %1476 }
 0x3db   : > { %v1479_v2 = vpop.permute.xlu0 %1478 }
 0x3dd   : > { %v1493_v52 = vpop.permute.xlu1 %1492 }
 0x3df   : > { %v1495_v5 = vpop.permute.xlu0 %1494 }
 0x3e1   : > { %v3559_v45 = vpop.permute.xlu1 %1512 }
 0x3e3   : > { %v3561_v53 = vpop.permute.xlu0 %1514 }
 0x3e5   : > { %v3563_v46 = vpop.permute.xlu1 %1528 }
 0x3e7   : > { %v3565_v32 = vpop.permute.xlu0 %1530 }
 0x3e9   : > { %v3567_v30 = vpop.permute.xlu1 %1544 }
 0x3eb   : > { %v3569_v47 = vpop.permute.xlu0 %1546 }
 0x3ed   : > { %v1449_v12 = vpop.permute.xlu1 %1448 }
 0x3ee   : > { %v1452_v16 = vsel %vm653_vm10, %v1445_v56, %v1449_v12  ;;  %v1454_v18 = vsel %vm653_vm10, %v1449_v12, %v1445_v56 }
 0x3ef   : > { %v1451_v24 = vpop.permute.xlu0 %1450  ;;  %v1456_v20 = vmul.f32 %v1454_v18, %v2963_v4  ;;  %v1457_v51 = vmul.f32 %v1452_v16, %v2959_v3 }
 0x3f0   : > { %v1453_v35 = vsel %vm653_vm10, %v1447_v38, %v1451_v24  ;;  %v1455_v19 = vsel %vm653_vm10, %v1451_v24, %v1447_v38 }
 0x3f1   : > { %v1458_v48 = vmul.f32 %v1455_v19, %v2963_v4  ;;  %v1459_v43 = vmul.f32 %v1453_v35, %v2959_v3  ;;  %v1465_v44 = vpop.permute.xlu1 %1464 }
 0x3f2   : > { %v1468_v63 = vsel %vm702_vm11, %v1461_v34, %v1465_v44  ;;  %v1470_v23 = vsel %vm702_vm11, %v1465_v44, %v1461_v34 }
 0x3f3   : > { %v1576_v59 = vpack.c.bf16 %v1458_v48, %v1456_v20  ;;  %v1467_v55 = vpop.permute.xlu0 %1466  ;;  %v1577_v42 = vpack.c.bf16 %v1459_v43, %v1457_v51  ;;  %v1472_v4 = vmul.f32 %v1470_v23, %v2972_v13  ;;  %v1473_v3 = vmul.f32 %v1468_v63, %v2968_v7 }
 0x3f4   : > { %v1469_v49 = vsel %vm702_vm11, %v1463_v36, %v1467_v55  ;;  %v1471_v54 = vsel %vm702_vm11, %v1467_v55, %v1463_v36 }
 0x3f5   : > { %v1474_v27 = vmul.f32 %v1471_v54, %v2972_v13  ;;  %v1475_v62 = vmul.f32 %v1469_v49, %v2968_v7  ;;  %1619 = vmatprep.subr.bf16.mxu1 %v1577_v42  ;;  %v1481_v56 = vpop.permute.xlu1 %1480 }
 0x3f6   : > { %v1484_v38 = vsel %vm751_vm12, %v1477_v50, %v1481_v56  ;;  %v1486_v34 = vsel %vm751_vm12, %v1481_v56, %v1477_v50  ;;  %1620 = vmatpush1.bf16.msra.mxu1 %v1576_v59 }
 0x3f7   : > { %v1578_v12 = vpack.c.bf16 %v1474_v27, %v1472_v4  ;;  %v1483_v16 = vpop.permute.xlu0 %1482  ;;  %v1579_v36 = vpack.c.bf16 %v1475_v62, %v1473_v3  ;;  %v1488_v7 = vmul.f32 %v1486_v34, %v2978_v15  ;;  %v1489_v24 = vmul.f32 %v1484_v38, %v2975_v14 }
 0x3f8   : > { %v1485_v18 = vsel %vm751_vm12, %v1479_v2, %v1483_v16  ;;  %v1487_v13 = vsel %vm751_vm12, %v1483_v16, %v1479_v2 }
 0x3f9   : > { %v1490_v35 = vmul.f32 %v1487_v13, %v2978_v15  ;;  %v1491_v19 = vmul.f32 %v1485_v18, %v2975_v14  ;;  %1621 = vmatprep.subr.bf16.mxu1 %v1579_v36  ;;  %v1497_v50 = vpop.permute.xlu1 %1496 }
 0x3fa   : > { %v1500_v20 = vsel %vm800_vm13, %v1493_v52, %v1497_v50  ;;  %v1502_v51 = vsel %vm800_vm13, %v1497_v50, %v1493_v52  ;;  %1622 = vmatpush1.bf16.msra.mxu1 %v1578_v12 }
 0x3fb   : > { %v1580_v48 = vpack.c.bf16 %v1490_v35, %v1488_v7  ;;  %v1499_v43 = vpop.permute.xlu0 %1498  ;;  %v1581_v2 = vpack.c.bf16 %v1491_v19, %v1489_v24  ;;  %v1504_v14 = vmul.f32 %v1502_v51, %v3075_v60  ;;  %v1505_v63 = vmul.f32 %v1500_v20, %v3058_v6 }
 0x3fc   : > { %v1501_v44 = vsel %vm800_vm13, %v1495_v5, %v1499_v43  ;;  %v1503_v15 = vsel %vm800_vm13, %v1499_v43, %v1495_v5 }
 0x3fd   : > { %v1506_v23 = vmul.f32 %v1503_v15, %v3075_v60  ;;  %v1507_v59 = vmul.f32 %v1501_v44, %v3058_v6  ;;  %1623 = vmatprep.subr.bf16.mxu1 %v1581_v2  ;;  %v1561_v52 = vpop.permute.xlu1 %1560 }
 0x3fe   : > { %1624 = vmatpush1.bf16.msra.mxu1 %v1580_v48 }
 0x3ff   : > { %v1582_v55 = vpack.c.bf16 %v1506_v23, %v1504_v14  ;;  %v1563_v42 = vpop.permute.xlu0 %1562  ;;  %v1583_v49 = vpack.c.bf16 %v1507_v59, %v1505_v63  ;;  %v2633_v23 = vld [vmem:[%s3824_s4 + $0x10] ss:$8 sps:$4 sm:$0xff]  }
 0x401   : > { %1625 = vmatprep.subr.bf16.mxu1 %v1583_v49  ;;  %v1517_v54 = vpop.permute.xlu1 %1516 }
 0x402   : > { %v1520_v5 = vsel %vm867_vm14, %v3559_v45, %v1517_v54  ;;  %v1522_v4 = vsel %vm867_vm14, %v1517_v54, %v3559_v45  ;;  %1626 = vmatpush1.bf16.msra.mxu1 %v1582_v55 }
 0x403   : > { %v1519_v60 = vpop.permute.xlu0 %1518  ;;  %1627 = vmatprep.subr.bf16.mxu1 %v1585_v39  ;;  %v1524_v27 = vmul.f32 %v1520_v5, %v3119_v33  ;;  %v1525_v62 = vmul.f32 %v1522_v4, %v3116_v31 }
 0x404   : > { %v1521_v6 = vsel %vm867_vm14, %v3561_v53, %v1519_v60  ;;  %v1523_v3 = vsel %vm867_vm14, %v1519_v60, %v3561_v53 }
 0x405   : > { %v1526_v45 = vmul.f32 %v1521_v6, %v3119_v33  ;;  %v1527_v56 = vmul.f32 %v1523_v3, %v3116_v31  ;;  %v1533_v38 = vpop.permute.xlu1 %1532 }
 0x406   : > { %v1536_v26 = vsel %vm916_vm15, %v3563_v46, %v1533_v38  ;;  %v1538_v25 = vsel %vm916_vm15, %v1533_v38, %v3563_v46  ;;  %1628 = vmatpush1.bf16.msra.mxu1 %v1584_v41 }
 0x407   : > { %v1586_v39 = vpack.c.bf16 %v1526_v45, %v1524_v27  ;;  %v1535_v53 = vpop.permute.xlu0 %1534  ;;  %v1587_v34 = vpack.c.bf16 %v1527_v56, %v1525_v62  ;;  %v1540_v12 = vmul.f32 %v1536_v26, %v3163_v28  ;;  %v1541_v16 = vmul.f32 %v1538_v25, %v3167_v29  ;;  %v2635_v45 = vld [vmem:[%s3826_s6 + $0x8] sm:$0xff]  }
 0x408   : > { %v1537_v31 = vsel %vm916_vm15, %v3565_v32, %v1535_v53  ;;  %v1539_v33 = vsel %vm916_vm15, %v1535_v53, %v3565_v32 }
 0x409   : > { %v1542_v46 = vmul.f32 %v1537_v31, %v3163_v28  ;;  %v1543_v57 = vmul.f32 %v1539_v33, %v3167_v29  ;;  %v1549_v21 = vpop.permute.xlu1 %1548  ;;  %1629 = vmatprep.subr.bf16.mxu1 %v1587_v34 }
 0x40a   : > { %v1552_v41 = vsel %vm965_vm0, %v3567_v30, %v1549_v21  ;;  %v1554_v36 = vsel %vm965_vm0, %v1549_v21, %v3567_v30  ;;  %1630 = vmatpush1.bf16.msra.mxu1 %v1586_v39 }
 0x40b   : > { %v1588_v32 = vpack.c.bf16 %v1542_v46, %v1540_v12  ;;  %v1551_v18 = vpop.permute.xlu0 %1550  ;;  %v1589_v13 = vpack.c.bf16 %v1543_v57, %v1541_v16  ;;  %v1556_v7 = vmul.f32 %v1552_v41, %v3207_v40  ;;  %v1557_v24 = vmul.f32 %v1554_v36, %v3188_v22 }
 0x40c   : > { %v1553_v28 = vsel %vm965_vm0, %v3569_v47, %v1551_v18  ;;  %v1555_v29 = vsel %vm965_vm0, %v1551_v18, %v3569_v47 }
 0x40d   : > { %v1558_v35 = vmul.f32 %v1553_v28, %v3207_v40  ;;  %v1559_v30 = vmul.f32 %v1555_v29, %v3188_v22  ;;  %v1565_v19 = vpop.permute.xlu1 %1564  ;;  %1631 = vmatprep.subr.bf16.mxu1 %v1589_v13 }
 0x40e   : > { %v1568_v50 = vsel %vm1014_vm1, %v1561_v52, %v1565_v19  ;;  %v1570_v20 = vsel %vm1014_vm1, %v1565_v19, %v1561_v52  ;;  %1632 = vmatpush1.bf16.msra.mxu1 %v1588_v32 }
 0x40f   : > { %v1590_v51 = vpack.c.bf16 %v1558_v35, %v1556_v7  ;;  %v1567_v48 = vpop.permute.xlu0 %1566  ;;  %v1591_v47 = vpack.c.bf16 %v1559_v30, %v1557_v24  ;;  %v1572_v22 = vmul.f32 %v3266_v9, %v1568_v50  ;;  %v1573_v2 = vmul.f32 %v3257_v37, %v1570_v20 }
 0x410   : > { %v1569_v43 = vsel %vm1014_vm1, %v1563_v42, %v1567_v48  ;;  %v1571_v40 = vsel %vm1014_vm1, %v1567_v48, %v1563_v42 }
 0x411   : > { %v1574_v44 = vmul.f32 %v3266_v9, %v1569_v43  ;;  %v1575_v15 = vmul.f32 %v3257_v37, %v1571_v40  ;;  %1633 = vmatprep.subr.bf16.mxu1 %v1591_v47 }
 0x412   : > { %1634 = vmatpush1.bf16.msra.mxu1 %v1590_v51 }
 0x413   : > { %v1592_v14 = vpack.c.bf16 %v1574_v44, %v1572_v22  ;;  %v1593_v63 = vpack.c.bf16 %v1575_v15, %v1573_v2 }
 0x415   : > { %1635 = vmatprep.subr.bf16.mxu1 %v1593_v63 }
 0x416   : > { %1636 = vmatpush1.bf16.msra.mxu1 %v1592_v14 }
 0x419   : > { %1652 = vmatmul.mubr.bf16.vlgmr.msra.gmra.mrb[4].mxu1 %v2633_v23 }
 0x41a   : > { %1754 = vmatprep.mubr.bf16.mxu1 %v2677_v58  ;;  %v2634_v58 = vld [vmem:[%s3826_s6] sm:$0xff]  }
 0x41e   : > { %v1600_v61 = vpop.permute.xlu1 %1599 }
 0x420   : > { %v1605_v9 = vpop.permute.xlu0 %1604 }
 0x422   : > { %v1679_v56 = vpop.permute.xlu1 %1678 }
 0x424   : > { %v1684_v38 = vpop.permute.xlu0 %1683 }
 0x426   : > { %v1689_v26 = vpop.permute.xlu1 %1688 }
 0x428   : > { %v1694_v25 = vpop.permute.xlu0 %1693 }
 0x4ec   : > { %v1653_v59 = vpop.f32.mrb[4].mxu1 }
 0x4ed   : > { %v1654_v52 = vadd.f32 %v1653_v59, %v1600_v61  ;;  %v1655_v55 = vpop.f32.mrb[5].mxu1 }
 0x4ee   : > { %v1656_v42 = vadd.f32 %v1655_v55, %v1600_v61  ;;  %v1657_v37 = vpop.f32.mrb[6].mxu1 }
 0x4ef   : > { %v1658_v49 = vadd.f32 %v1657_v37, %v1605_v9  ;;  %v1659_v54 = vpop.f32.mrb[7].mxu1  ;;  %v1662_v4 = vmax.f32 %v1654_v52, 0.0 }
 0x4f0   : > { %v1660_v5 = vadd.f32 %v1659_v54, %v1605_v9  ;;  %v1663_v6 = vmax.f32 %v1656_v42, 0.0 }
 0x4f1   : > { %v1664_v60 = vmax.f32 %v1658_v49, 0.0 }
 0x4f2   : > { %v1665_v3 = vmax.f32 %v1660_v5, 0.0 }
 0x4f3   : > { %v1670_v27 = vpack.c.bf16 %v1664_v60, %v1662_v4 }
 0x4f4   : > { %v1671_v62 = vpack.c.bf16 %v1665_v3, %v1663_v6 }
 0x4f6   : > { %1712 = vmatprep.subr.bf16.mxu0 %v1671_v62  ;;  %2385 = vmatprep.subr.bf16.mxu1 %v1671_v62 }
 0x4f7   : > { %1713 = vmatpush1.bf16.msra.mxu0 %v1670_v27  ;;  %2386 = vmatpush1.bf16.msra.mxu1 %v1670_v27 }
 0x4fa   : > { %2364 = vmatmul.mubr.msk.bf16.vlgmr.msra.gmra.mrb[4].mxu0 %vm1390_vm4, %v2634_v58  ;;  %2365 = vmatmul.mubr.msk.bf16.vlgmr.msra.gmra.mrb[8].mxu1 %vm1390_vm4, %v2635_v45 }
 0x4fb   : > { %1932 = vmatprep.mubr.f32.mxu1 %v2668_v17 }
 0x5cd   : > { %v1746_v39 = vpop.f32.mrb[4].mxu0  ;;  %v1756_v53 = vpop.f32.mrb[8].mxu1 }
 0x5ce   : > { %v1747_v34 = vadd.f32 %v1746_v39, %v1679_v56  ;;  %v1757_v31 = vadd.f32 %v1756_v53, %v1689_v26  ;;  %v1748_v33 = vpop.f32.mrb[5].mxu0  ;;  %v1758_v12 = vpop.f32.mrb[9].mxu1 }
 0x5cf   : > { %v3698_v16 = vadd.f32 %v1748_v33, %v1679_v56  ;;  %v3700_v46 = vadd.f32 %v1758_v12, %v1689_v26  ;;  %v1750_v57 = vpop.f32.mrb[6].mxu0  ;;  %v1760_v21 = vpop.f32.mrb[10].mxu1 }
 0x5d0   : > { %v1765_v41 = vmax.f32 %v1747_v34, %v1757_v31  ;;  %v1751_v36 = vadd.f32 %v1750_v57, %v1684_v38  ;;  %v1761_v32 = vadd.f32 %v1760_v21, %v1694_v25  ;;  %v1752_v18 = vpop.f32.mrb[7].mxu0  ;;  %v1762_v13 = vpop.f32.mrb[11].mxu1 }
 0x5d1   : > { %v1774_v28 = vmax.f32 %v3698_v16, %v3700_v46  ;;  %v1753_v29 = vadd.f32 %v1752_v18, %v1684_v38  ;;  %v3704_v7 = vadd.f32 %v1762_v13, %v1694_v25 }
 0x5d2   : > { %v1766_v24 = vmax.f32 %v1751_v36, %v1761_v32 }
 0x5d3   : > { %v1775_v35 = vmax.f32 %v1753_v29, %v3704_v7 }
 0x5d4   : > { %v1767_v30 = vmax.f32 %v1765_v41, %v1766_v24 }
 0x5d5   : > { %v1776_v19 = vmax.f32 %v1774_v28, %v1775_v35 }
 0x5d6   : > { %v1768_v50 = vrot.slane %v1767_v30, 4 }
 0x5d7   : > { %v1777_v20 = vrot.slane %v1776_v19, 4 }
 0x5d8   : > { %v1769_v51 = vmax.f32 %v1767_v30, %v1768_v50  ;;  %v2678_v30 = vmov 1966171168  }
 0x5d9   : > { %v1778_v48 = vmax.f32 %v1776_v19, %v1777_v20  ;;  %v2049_v19 = vunpack.c.l.s4 %v2678_v30  ;;  %v2087_v20 = vpop.permute.xlu0 %2086 }
 0x5da   : > { %v1770_v47 = vrot.slane %v1769_v51, 2 }
 0x5db   : > { %v1779_v43 = vrot.slane %v1778_v48, 2 }
 0x5dc   : > { %v1771_v40 = vmax.f32 %v1769_v51, %v1770_v47 }
 0x5dd   : > { %v1780_v22 = vmax.f32 %v1778_v48, %v1779_v43 }
 0x5de   : > { %v1772_v2 = vrot.slane %v1771_v40, 1 }
 0x5df   : > { %v1781_v44 = vrot.slane %v1780_v22, 1 }
 0x5e0   : > { %v1773_v15 = vmax.f32 %v1771_v40, %v1772_v2 }
 0x5e1   : > { %v1782_v14 = vmax.f32 %v1780_v22, %v1781_v44 }
 0x5e2   : > { %v1783_v63 = vsub.f32 %v1747_v34, %v1773_v15  ;;  %v1785_v23 = vsub.f32 %v1751_v36, %v1773_v15  ;;  %v1787_v61 = vsub.f32 %v1757_v31, %v1773_v15  ;;  %v1789_v59 = vsub.f32 %v1761_v32, %v1773_v15 }
 0x5e3   : > { %vm2001_vm5 = vcmp.eq.f32.partialorder %v1747_v34, %v1773_v15  ;;  %vm2003_vm6 = vcmp.eq.f32.partialorder %v1751_v36, %v1773_v15  ;;  %vm2005_vm7 = vcmp.eq.f32.partialorder %v1757_v31, %v1773_v15  ;;  %vm2007_vm8 = vcmp.eq.f32.partialorder %v1761_v32, %v1773_v15 }
 0x5e4   : > { %v1791_v52 = vmul.f32 1.442695, %v1783_v63  ;;  %v1795_v55 = vmul.f32 1.442695, %v1785_v23  ;;  %v1799_v9 = vmul.f32 1.442695, %v1787_v61  ;;  %v1784_v42 = vsub.f32 %v3698_v16, %v1782_v14 }
 0x5e5   : > { %v1803_v37 = vmul.f32 1.442695, %v1789_v59  ;;  %v2009_v49 = vsel %vm2001_vm5, %v2760_v1, 32  ;;  %v2011_v54 = vsel %vm2003_vm6, %v2779_v11, 32  ;;  %v2013_v5 = vsel %vm2005_vm7, %v2773_v8, 32 }
 0x5e6   : > { %2636 = vpow2.f32 %v1791_v52  ;;  %v2015_v4 = vsel %vm2007_vm8, %v2776_v10, 32  ;;  %vm2017_vm9 = vcmp.lt.s32.totalorder %v2009_v49, %v2013_v5  ;;  %v1786_v60 = vsub.f32 %v1753_v29, %v1782_v14 }
 0x5e7   : > { %2638 = vpow2.f32 %v1795_v55  ;;  %v2018_v6 = vsel %vm2017_vm9, %v2009_v49, %v2013_v5  ;;  %vm2019_vm10 = vcmp.lt.s32.totalorder %v2011_v54, %v2015_v4  ;;  %v1788_v3 = vsub.f32 %v3700_v46, %v1782_v14 }
 0x5e8   : > { %2640 = vpow2.f32 %v1799_v9  ;;  %v2020_v27 = vsel %vm2019_vm10, %v2011_v54, %v2015_v4  ;;  %v1790_v62 = vsub.f32 %v3704_v7, %v1782_v14  ;;  %v1793_v58 = vmul.f32 1.442695, %v1784_v42  ;;  %v2097_v42 = vpop.permute.xlu0 %2096 }
 0x5e9   : > { %2642 = vpow2.f32 %v1803_v37  ;;  %vm2021_vm11 = vcmp.lt.s32.totalorder %v2018_v6, %v2020_v27  ;;  %v1797_v45 = vmul.f32 1.442695, %v1786_v60  ;;  %v1801_v38 = vmul.f32 1.442695, %v1788_v3 }
 0x5ea   : > { %v2022_v56 = vsel %vm2021_vm11, %v2018_v6, %v2020_v27  ;;  %2644 = vpow2.f32 %v1793_v58  ;;  %vm2002_vm12 = vcmp.eq.f32.partialorder %v3698_v16, %v1782_v14  ;;  %vm2004_vm13 = vcmp.eq.f32.partialorder %v1753_v29, %v1782_v14  ;;  %v2082_v29 = vpop.permute.xlu1 %2081 }
 0x5eb   : > { %v2023_v26 = vrot.slane %v2022_v56, 4  ;;  %2646 = vpow2.f32 %v1797_v45  ;;  %vm2006_vm14 = vcmp.eq.f32.partialorder %v3700_v46, %v1782_v14  ;;  %v1805_v25 = vmul.f32 1.442695, %v1790_v62 }
 0x5ec   : > { %vm2008_vm15 = vcmp.eq.f32.partialorder %v3704_v7, %v1782_v14  ;;  %v2010_v39 = vsel %vm2002_vm12, %v2760_v1, 32  ;;  %v2012_v53 = vsel %vm2004_vm13, %v2779_v11, 32  ;;  %v2014_v34 = vsel %vm2006_vm14, %v2773_v8, 32 }
 0x5ed   : > { %vm2024_vm0 = vcmp.lt.s32.totalorder %v2022_v56, %v2023_v26  ;;  %v2016_v31 = vsel %vm2008_vm15, %v2776_v10, 32  ;;  %2648 = vpow2.f32 %v1801_v38  ;;  %vm2032_vm1 = vcmp.lt.s32.totalorder %v2010_v39, %v2014_v34 }
 0x5ee   : > { %v2025_v33 = vsel %vm2024_vm0, %v2022_v56, %v2023_v26  ;;  %vm2034_vm2 = vcmp.lt.s32.totalorder %v2012_v53, %v2016_v31  ;;  %v2033_v16 = vsel %vm2032_vm1, %v2010_v39, %v2014_v34  ;;  %2650 = vpow2.f32 %v1805_v25  ;;  %v2092_v63 = vpop.permute.xlu1 %2091 }
 0x5ef   : > { %v2026_v12 = vrot.slane %v2025_v33, 2  ;;  %v2035_v57 = vsel %vm2034_vm2, %v2012_v53, %v2016_v31  ;;  %v2050_v14 = vunpack.c.0.s8 %v2049_v19  ;;  %vm3763_vm0 = vcmp.lt.s32.totalorder %v520_v0, 256 }
 0x5f0   : > { %v3721_v46 = vpop.eup %2636  ;;  %vm2036_vm3 = vcmp.lt.s32.totalorder %v2033_v16, %v2035_v57  ;;  %vm1855_vm2 = vcmask 261120  }
 0x5f1   : > { %v3723_v21 = vpop.eup %2638  ;;  %vm2027_vm4 = vcmp.lt.s32.totalorder %v2025_v33, %v2026_v12  ;;  %v2037_v41 = vsel %vm2036_vm3, %v2033_v16, %v2035_v57  ;;  %v3750_v3 = vsub.s32 %v2050_v14, %v2760_v1 }
 0x5f2   : > { %v3725_v36 = vpop.eup %2640  ;;  %v1807_v32 = vadd.f32 %v3723_v21, %v3721_v46  ;;  %v2028_v18 = vsel %vm2027_vm4, %v2025_v33, %v2026_v12  ;;  %v2038_v13 = vrot.slane %v2037_v41, 4 }
 0x5f3   : > { %v3729_v28 = vpop.eup %2642  ;;  %v2029_v7 = vrot.slane %v2028_v18, 1 }
 0x5f4   : > { %v3731_v24 = vpop.eup %2644  ;;  %v1808_v35 = vadd.f32 %v3725_v36, %v1807_v32  ;;  %vm2039_vm5 = vcmp.lt.s32.totalorder %v2037_v41, %v2038_v13 }
 0x5f5   : > { %v3734_v50 = vpop.eup %2646  ;;  %vm2030_vm6 = vcmp.lt.s32.totalorder %v2028_v18, %v2029_v7  ;;  %v2040_v51 = vsel %vm2039_vm5, %v2037_v41, %v2038_v13 }
 0x5f6   : > { %v1809_v48 = vadd.f32 %v3729_v28, %v1808_v35  ;;  %v2031_v47 = vsel %vm2030_vm6, %v2028_v18, %v2029_v7  ;;  %v1816_v43 = vadd.f32 %v3734_v50, %v3731_v24  ;;  %v2041_v40 = vrot.slane %v2040_v51, 2 }
 0x5f7   : > { %vm2071_vm7 = vcmp.eq.s32.totalorder %v2760_v1, %v2031_v47  ;;  %vm2073_vm8 = vcmp.eq.s32.totalorder %v2779_v11, %v2031_v47  ;;  %vm2075_vm9 = vcmp.eq.s32.totalorder %v2773_v8, %v2031_v47  ;;  %v3742_v22 = vpop.eup %2648  ;;  %vm2077_vm10 = vcmp.eq.s32.totalorder %v2776_v10, %v2031_v47 }
 0x5f8   : > { %v1810_v2 = vrot.slane %v1809_v48, 4  ;;  %v2099_v44 = vsel %vm2071_vm7, %v2082_v29, 0.0  ;;  %v2101_v15 = vsel %vm2073_vm8, %v2087_v20, 0.0  ;;  %v1817_v61 = vadd.f32 %v3742_v22, %v1816_v43  ;;  %v3746_v59 = vpop.eup %2650 }
 0x5f9   : > { %v2107_v23 = vadd.f32 %v2101_v15, %v2099_v44  ;;  %vm2042_vm11 = vcmp.lt.s32.totalorder %v2040_v51, %v2041_v40  ;;  %v2103_v55 = vsel %vm2075_vm9, %v2092_v63, 0.0  ;;  %v2105_v4 = vsel %vm2077_vm10, %v2097_v42, 0.0 }
 0x5fa   : > { %v1811_v52 = vadd.f32 %v1810_v2, %v1809_v48  ;;  %v2043_v9 = vsel %vm2042_vm11, %v2040_v51, %v2041_v40  ;;  %v1818_v49 = vadd.f32 %v3746_v59, %v1817_v61 }
 0x5fb   : > { %v2108_v37 = vadd.f32 %v2107_v23, %v2103_v55  ;;  %v2044_v54 = vrot.slane %v2043_v9, 1 }
 0x5fc   : > { %v1812_v5 = vrot.slane %v1811_v52, 2  ;;  %v1819_v6 = vrot.slane %v1818_v49, 4 }
 0x5fd   : > { %v2109_v60 = vadd.f32 %v2108_v37, %v2105_v4  ;;  %vm2045_vm12 = vcmp.lt.s32.totalorder %v2043_v9, %v2044_v54 }
 0x5fe   : > { %v1813_v27 = vadd.f32 %v1812_v5, %v1811_v52  ;;  %v2046_v62 = vsel %vm2045_vm12, %v2043_v9, %v2044_v54  ;;  %v1820_v45 = vadd.f32 %v1819_v6, %v1818_v49  ;;  %v1851_v6 = vld [vmem:[%s490_s23] sm:$0xff] }
 0x5ff   : > { %v2110_v58 = vrot.slane %v2109_v60, 4  ;;  %v2047_v56 = vcombine.low %v2031_v47, %v2046_v62  ;;  %vm2072_vm13 = vcmp.eq.s32.totalorder %v2760_v1, %v2046_v62  ;;  %vm2074_vm14 = vcmp.eq.s32.totalorder %v2779_v11, %v2046_v62 }
 0x600   : > { %v1814_v38 = vrot.slane %v1813_v27, 1  ;;  %vm2076_vm15 = vcmp.eq.s32.totalorder %v2773_v8, %v2046_v62  ;;  %v1821_v25 = vrot.slane %v1820_v45, 2  ;;  %v2100_v53 = vsel %vm2072_vm13, %v2082_v29, 0.0 }
 0x601   : > { %v2111_v26 = vadd.f32 %v2110_v58, %v2109_v60  ;;  %v2054_v39 = vrot.slane %v2047_v56, %v3750_v3  ;;  %vm2078_vm1 = vcmp.eq.s32.totalorder %v2776_v10, %v2046_v62  ;;  %v2102_v1 = vsel %vm2074_vm14, %v2087_v20, 0.0  ;;  %v1853_v62 = vld [vmem:[%s490_s23 + $0x10] sm:$0xff]  ;;  %v1854_v58 = vld [vmem:[%s490_s23 + $0x18] sm:$0xff] }
 0x602   : > { %v1815_v34 = vadd.f32 %v1814_v38, %v1813_v27  ;;  %v1822_v11 = vadd.f32 %v1821_v25, %v1820_v45  ;;  %v2116_v12 = vadd.f32 %v2102_v1, %v2100_v53  ;;  %v2104_v16 = vsel %vm2076_vm15, %v2092_v63, 0.0  ;;  %v1852_v27 = vld [vmem:[%s490_s23 + $0x8] sm:$0xff] }
 0x603   : > { %v2112_v8 = vrot.slane %v2111_v26, 2  ;;  %v2061_v33 = vrot.slane %v2054_v39, %v3750_v3  ;;  %v2106_v32 = vsel %vm2078_vm1, %v2097_v42, 0.0 }
 0x604   : > { %2652 = vrcp.f32 %v1815_v34  ;;  %v1823_v41 = vrot.slane %v1822_v11, 1  ;;  %v2117_v0 = vadd.f32 %v2116_v12, %v2104_v16 }
 0x605   : > { %v2113_v57 = vadd.f32 %v2112_v8, %v2111_v26  ;;  %2066 = vst.msk [vmem:[%s509_s29] sm:$0x3] %vm3763_vm0, %v2061_v33 }
 0x606   : > { %v1824_v18 = vadd.f32 %v1823_v41, %v1822_v11  ;;  %v2118_v13 = vadd.f32 %v2117_v0, %v2106_v32 }
 0x607   : > { %v2114_v10 = vrot.slane %v2113_v57, 1 }
 0x608   : > { %2654 = vrcp.f32 %v1824_v18  ;;  %v2119_v29 = vrot.slane %v2118_v13, 4 }
 0x609   : > { %v2115_v35 = vadd.f32 %v2114_v10, %v2113_v57 }
 0x60a   : > { %v2120_v7 = vadd.f32 %v2119_v29, %v2118_v13 }
 0x60b   : > { %v2399_v43 = vtrunc.f32 %v2115_v35 }
 0x60c   : > { %v2121_v30 = vrot.slane %v2120_v7, 2 }
 0x60d   : > { %v2400_v9 = vcvt.f32.s32 %v2399_v43 }
 0x60e   : > { %v2653_v19 = vpop.eup %2652  ;;  %v2122_v20 = vadd.f32 %v2121_v30, %v2120_v7 }
 0x60f   : > { %v1827_v51 = vmul.f32 %v2653_v19, %v3721_v46  ;;  %v1829_v48 = vmul.f32 %v2653_v19, %v3723_v21  ;;  %v1831_v47 = vmul.f32 %v2653_v19, %v3725_v36  ;;  %v1833_v40 = vmul.f32 %v2653_v19, %v3729_v28 }
 0x610   : > { %v2123_v2 = vrot.slane %v2122_v20, 1 }
 0x611   : > { %v1835_v44 = vadd.f32 1e-06, %v1827_v51  ;;  %v1837_v46 = vadd.f32 1e-06, %v1829_v48  ;;  %v2379_v15 = vpack.c.bf16 %v1829_v48, %v1827_v51  ;;  %v1839_v21 = vadd.f32 1e-06, %v1831_v47 }
 0x612   : > { %v1841_v14 = vadd.f32 1e-06, %v1833_v40  ;;  %v2383_v36 = vpack.c.bf16 %v1833_v40, %v1831_v47  ;;  %v2655_v63 = vpop.eup %2654  ;;  %v2124_v23 = vadd.f32 %v2123_v2, %v2122_v20 }
 0x613   : > { %1843 = vst [vmem:[%s3780_s16] sm:$0xff] %v1835_v44  ;;  %1845 = vst [vmem:[%s3780_s16 + $0x10] sm:$0xff] %v1837_v46  ;;  %v1828_v61 = vmul.f32 %v2655_v63, %v3731_v24  ;;  %v1830_v52 = vmul.f32 %v2655_v63, %v3734_v50  ;;  %v1832_v28 = vmul.f32 %v2655_v63, %v3742_v22 }
 0x614   : > { %v1834_v55 = vmul.f32 %v2655_v63, %v3746_v59  ;;  %1847 = vst [vmem:[%s3780_s16 + $0x20] sm:$0xff] %v1839_v21  ;;  %1849 = vst [vmem:[%s3780_s16 + $0x30] sm:$0xff] %v1841_v14  ;;  %v2401_v42 = vtrunc.f32 %v2124_v23 }
 0x615   : > { %v1836_v37 = vadd.f32 1e-06, %v1828_v61  ;;  %v1838_v49 = vadd.f32 1e-06, %v1830_v52  ;;  %v2377_v54 = vpack.c.bf16 %v1830_v52, %v1828_v61  ;;  %v1840_v5 = vadd.f32 1e-06, %v1832_v28 }
 0x616   : > { %v2402_v24 = vcvt.f32.s32 %v2401_v42  ;;  %v1842_v4 = vadd.f32 1e-06, %v1834_v55  ;;  %v2381_v60 = vpack.c.bf16 %v1834_v55, %v1832_v28 }
 0x617   : > { %1844 = vst [vmem:[%s3780_s16 + $0x8] sm:$0xff] %v1836_v37  ;;  %1846 = vst [vmem:[%s3780_s16 + $0x18] sm:$0xff] %v1838_v49  ;;  %2378 = vmatprep.subr.bf16.mxu1 %v2377_v54 }
 0x618   : > { %1848 = vst [vmem:[%s3780_s16 + $0x28] sm:$0xff] %v1840_v5  ;;  %v2127_v50 = vcombine.low %v2400_v9, %v2402_v24  ;;  %2380 = vmatpush1.bf16.msra.mxu1 %v2379_v15  ;;  %1850 = vst [vmem:[%s3780_s16 + $0x38] sm:$0xff] %v1842_v4 }
 0x619   : > { %2382 = vmatprep.subr.bf16.mxu1 %v2381_v60 }
 0x61a   : > { %v2134_v22 = vrot.slane %v2127_v50, %v3750_v3 }
 0x61c   : > { %v2141_v59 = vrot.slane %v2134_v22, %v3750_v3  ;;  %2384 = vmatpush1.bf16.msra.mxu1 %v2383_v36 }
 0x61e   : > { %2142 = vst.msk [vmem:[%s513_s18] sm:$0x3] %vm3763_vm0, %v2141_v59 }
 0x61f   : > { %2366 = vmatmul.mubr.msk.f32.vlgmr.msra.gmra.mrb[12].mxu1 %vm1855_vm2, %v1851_v6 }
 0x620   : > { %1938 = vmatprep.mubr.f32.mxu1 %v2668_v17 }
 0x623   : > { %2367 = vmatmul.mubr.msk.f32.gmra.mrb[14].mxu1 %vm1855_vm2, %v1852_v27 }
 0x624   : > { %1944 = vmatprep.mubr.f32.mxu1 %v2668_v17 }
 0x627   : > { %2368 = vmatmul.mubr.msk.f32.gmra.mrb[16].mxu1 %vm1855_vm2, %v1853_v62 }
 0x628   : > { %1950 = vmatprep.mubr.f32.mxu1 %v2668_v17 }
 0x62b   : > { %2369 = vmatmul.mubr.msk.f32.gmra.mrb[18].mxu1 %vm1855_vm2, %v1854_v58 }
 0x6f2   : > { %v1934_v3 = vpop.f32.mrb[12].mxu1 }
 0x6f3   : > { %v1936_v45 = vpop.f32.mrb[13].mxu1  ;;  %v1935_v38 = vadd.f32 1e-06, %v1934_v3 }
 0x6f4   : > { %v1937_v39 = vadd.f32 1e-06, %v1936_v45 }
 0x6f6   : > { %v1940_v56 = vpop.f32.mrb[14].mxu1 }
 0x6f7   : > { %v1941_v26 = vadd.f32 1e-06, %v1940_v56  ;;  %v1942_v25 = vpop.f32.mrb[15].mxu1 }
 0x6f8   : > { %v1943_v53 = vadd.f32 1e-06, %v1942_v25 }
 0x6f9   : > { %v1957_v34 = vadd.f32 %v1941_v26, %v1935_v38 }
 0x6fa   : > { %v1966_v31 = vadd.f32 %v1943_v53, %v1937_v39  ;;  %v1946_v1 = vpop.f32.mrb[16].mxu1 }
 0x6fb   : > { %v1947_v8 = vadd.f32 1e-06, %v1946_v1  ;;  %v1948_v11 = vpop.f32.mrb[17].mxu1 }
 0x6fc   : > { %v1949_v33 = vadd.f32 1e-06, %v1948_v11 }
 0x6fd   : > { %v1958_v12 = vadd.f32 %v1957_v34, %v1947_v8 }
 0x6fe   : > { %v1967_v16 = vadd.f32 %v1966_v31, %v1949_v33  ;;  %v1952_v57 = vpop.f32.mrb[18].mxu1 }
 0x6ff   : > { %v1953_v17 = vadd.f32 1e-06, %v1952_v57  ;;  %v1954_v41 = vpop.f32.mrb[19].mxu1 }
 0x700   : > { %v1955_v0 = vadd.f32 1e-06, %v1954_v41 }
 0x701   : > { %v1959_v32 = vadd.f32 %v1958_v12, %v1953_v17 }
 0x702   : > { %v1968_v18 = vadd.f32 %v1967_v16, %v1955_v0 }
 0x703   : > { %v1960_v13 = vrot.slane %v1959_v32, 4 }
 0x704   : > { %v1969_v10 = vrot.slane %v1968_v18, 4 }
 0x705   : > { %v1961_v29 = vadd.f32 %v1960_v13, %v1959_v32 }
 0x706   : > { %v1970_v7 = vadd.f32 %v1969_v10, %v1968_v18 }
 0x707   : > { %v1962_v35 = vrot.slane %v1961_v29, 2 }
 0x708   : > { %v1971_v30 = vrot.slane %v1970_v7, 2 }
 0x709   : > { %v1963_v19 = vadd.f32 %v1962_v35, %v1961_v29 }
 0x70a   : > { %v1972_v20 = vadd.f32 %v1971_v30, %v1970_v7 }
 0x70b   : > { %v1964_v51 = vrot.slane %v1963_v19, 1 }
 0x70c   : > { %v1973_v48 = vrot.slane %v1972_v20, 1 }
 0x70d   : > { %v1965_v47 = vadd.f32 %v1964_v51, %v1963_v19 }
 0x70e   : > { %v1974_v43 = vadd.f32 %v1973_v48, %v1972_v20 }
 0x70f   : > { %2656 = vrcp.f32 %v1965_v47 }
 0x710   : > { %2658 = vrcp.f32 %v1974_v43 }
 0x719   : > { %v2657_v40 = vpop.eup %2656 }
 0x71a   : > { %v2659_v2 = vpop.eup %2658  ;;  %v1977_v44 = vmul.f32 %v2657_v40, %v1935_v38  ;;  %v1979_v46 = vmul.f32 %v2657_v40, %v1941_v26  ;;  %v1981_v15 = vmul.f32 %v2657_v40, %v1947_v8  ;;  %v1983_v21 = vmul.f32 %v2657_v40, %v1953_v17 }
 0x71b   : > { %v1978_v14 = vmul.f32 %v2659_v2, %v1937_v39  ;;  %v1980_v36 = vmul.f32 %v2659_v2, %v1943_v53  ;;  %v1982_v63 = vmul.f32 %v2659_v2, %v1949_v33  ;;  %v1984_v23 = vmul.f32 %v2659_v2, %v1955_v0 }
 0x71c   : > { %v1985_v61 = vadd.f32 1e-06, %v1977_v44  ;;  %v1987_v52 = vadd.f32 1e-06, %v1979_v46  ;;  %v1989_v28 = vadd.f32 1e-06, %v1981_v15 }
 0x71d   : > { %v1991_v55 = vadd.f32 1e-06, %v1983_v21  ;;  %v1986_v9 = vadd.f32 1e-06, %v1978_v14  ;;  %v1988_v42 = vadd.f32 1e-06, %v1980_v36 }
 0x71e   : > { %1993 = vst [vmem:[%s505_s20] sm:$0xff] %v1985_v61  ;;  %1995 = vst [vmem:[%s505_s20 + $0x10] sm:$0xff] %v1987_v52  ;;  %v1990_v37 = vadd.f32 1e-06, %v1982_v63  ;;  %v1992_v49 = vadd.f32 1e-06, %v1984_v23 }
 0x71f   : > { %1997 = vst [vmem:[%s505_s20 + $0x20] sm:$0xff] %v1989_v28  ;;  %1999 = vst [vmem:[%s505_s20 + $0x30] sm:$0xff] %v1991_v55 }
 0x720   : > { %1994 = vst [vmem:[%s505_s20 + $0x8] sm:$0xff] %v1986_v9  ;;  %1996 = vst [vmem:[%s505_s20 + $0x18] sm:$0xff] %v1988_v42 }
 0x721   : > { %1998 = vst [vmem:[%s505_s20 + $0x28] sm:$0xff] %v1990_v37  ;;  %2000 = vst [vmem:[%s505_s20 + $0x38] sm:$0xff] %v1992_v49 }
 0x722 PF: > { %s24_s25 = sadd.s32 1, %s2666_s25  }
 0x723   : > { %p21_p4 = scmp.ge.s32.totalorder %s24_s25, 4  }
 0x725   :  { %23 = sbr.rel (!%p21_p4) target bundleno = 1 (0x1), region = 135 }

</bundles_post_ra>
